<compile_context>
chip_gen: v6e
topology: v6e:2x2x1
jax: 0.10.0
libtpu: 0.0.40
codegen_flags: <defaults>
</compile_context>

<pallas_src>
import functools

import jax
import jax.numpy as jnp
from jax import lax
from jax.experimental import pallas as pl
from jax.experimental.pallas import tpu as pltpu


def projection_head_kernel(x_ref, w1_ref, b1_ref, w2_ref, b2_ref,
                           gamma_ref, beta_ref, o_ref, *,
                           inv_p, approximate_gelu):
    # Linear(E -> P): native-dtype operands feed the MXU, f32 accumulation.
    projected = jnp.dot(x_ref[...], w1_ref[...],
                        preferred_element_type=jnp.float32)
    projected = projected + b1_ref[...]          # b1 is already f32 (1, P)

    if approximate_gelu:
        # tanh GELU routes through the EUP (useful on v5e's weaker VPU).
        h = jax.nn.gelu(projected, approximate=True)
    else:
        # exact erf GELU (matches PyTorch nn.GELU default)
        h = 0.5 * projected * (1.0 + lax.erf(projected * (1.0 / jnp.sqrt(2.0))))

    # Linear(P -> P): cast activations to weight dtype (no-op for f32, bf16 MXU
    # path when weights are bf16), accumulate f32.
    h = jnp.dot(h.astype(w2_ref.dtype), w2_ref[...],
                preferred_element_type=jnp.float32)

    # Dropout(p=0) is identity in forward; residual add (fold b2 in as well).
    y = h + b2_ref[...] + projected

    # LayerNorm over last dim (eps=1e-5, affine) -- one-pass statistics:
    # a single XLU sweep each for sum and sum-of-squares.
    s = jnp.sum(y, axis=-1, keepdims=True)
    sq = jnp.sum(y * y, axis=-1, keepdims=True)
    mean = s * inv_p
    var = jnp.maximum(sq * inv_p - mean * mean, 0.0)
    y = (y - mean) * lax.rsqrt(var + 1e-5)
    o_ref[...] = (y * gamma_ref[...] + beta_ref[...]).astype(o_ref.dtype)


def _vmem_capacity_bytes():
    try:
        return int(pltpu.get_tpu_info().vmem_capacity_bytes)
    except Exception:
        return 64 << 20  # conservative default (v7x per-TensorCore VMEM)


def _footprint_bytes(block_b, E, P, x_dtype, w_dtype, weight_buffers):
    act = jnp.dtype(x_dtype).itemsize
    wgt = jnp.dtype(w_dtype).itemsize
    weights = weight_buffers * ((E * P + P * P) * wgt + 4 * P * 4)
    io = 2 * block_b * E * act + 2 * block_b * P * act   # double-buffered x / out tiles
    live = 4 * block_b * P * 4                           # projected / h / y / temps (f32)
    return weights + io + live


def _pick_block_b(B, E, P, x_dtype, w_dtype, budget):
    """Largest batch tile that divides B, fits the VMEM budget, and (when
    possible) leaves >= 2 grid steps so both v7x TensorCores get work."""
    min_b = 16 if jnp.dtype(x_dtype).itemsize < 4 else 8   # bf16 packs 16 rows/vreg
    cands = [c for c in (1024, 512, 256, 128, 64, 32, 16, 8) if c >= min_b]
    for need_two_steps in (True, False):
        for c in cands:
            if B % c != 0:
                continue
            if _footprint_bytes(c, E, P, x_dtype, w_dtype, 1) > budget:
                continue
            if need_two_steps and B // c < 2:
                continue
            return c
    return B  # block equal to the full dim is always legal


def projection_head(x, w1, b1, w2, b2, gamma, beta, *,
                    block_b=None, use_bf16_matmul=False, approximate_gelu=False):
    """x: [B, E]; w1: [E, P]; w2: [P, P]; b1/b2/gamma/beta: [P] or [1, P]."""
    B, E = x.shape
    P = w1.shape[1]
    out_dtype = x.dtype

    # Opt-in bf16 MXU path (native rate on v6e/v7x); deviates slightly from the
    # all-f32 PyTorch reference, so it is off by default.
    if use_bf16_matmul:
        x = x.astype(jnp.bfloat16)
        w1 = w1.astype(jnp.bfloat16)
        w2 = w2.astype(jnp.bfloat16)

    # Pre-cast the small (1, P) params to f32 once on the host side so the
    # kernel body never re-emits per-grid-step casts/broadcasts for them.
    b1 = jnp.asarray(b1, jnp.float32).reshape(1, P)
    b2 = jnp.asarray(b2, jnp.float32).reshape(1, P)
    gamma = jnp.asarray(gamma, jnp.float32).reshape(1, P)
    beta = jnp.asarray(beta, jnp.float32).reshape(1, P)

    capacity = _vmem_capacity_bytes()
    budget = int(0.8 * capacity)                 # never over-commit physical VMEM
    if block_b is None:
        block_b = _pick_block_b(B, E, P, x.dtype, w1.dtype, budget)
    assert B % block_b == 0, f"batch {B} must be divisible by block_b {block_b}"
    grid = (B // block_b,)

    # Footprint counted with double-buffered weights (worst case if Buffered(1)
    # is not honored), with headroom, capped at the generation-aware budget.
    est = _footprint_bytes(block_b, E, P, x.dtype, w1.dtype, 2)
    vmem_limit = int(min(budget, max(32 << 20, 2 * est)))

    act_bytes = jnp.dtype(x.dtype).itemsize
    wgt_bytes = jnp.dtype(w1.dtype).itemsize
    cost = pl.CostEstimate(
        flops=2 * B * (E * P + P * P),
        transcendentals=B * P,
        bytes_accessed=(B * E + B * P) * act_bytes
                       + (E * P + P * P + 4 * P) * wgt_bytes,
    )

    kernel = functools.partial(projection_head_kernel,
                               inv_p=1.0 / float(P),
                               approximate_gelu=approximate_gelu)

    tiled_x = pl.BlockSpec((block_b, E), lambda i: (i, 0))    # pipelined
    tiled_o = pl.BlockSpec((block_b, P), lambda i: (i, 0))    # lane-dense output

    def _build_and_run(single_buffer_weights):
        if single_buffer_weights:
            # Constant index_map -> single buffer is enough; halves weight VMEM.
            resident = lambda shape: pl.BlockSpec(
                shape, lambda i: (0, 0), pipeline_mode=pl.Buffered(1))
        else:
            resident = lambda shape: pl.BlockSpec(shape, lambda i: (0, 0))
        return pl.pallas_call(
            kernel,
            out_shape=jax.ShapeDtypeStruct((B, P), out_dtype),
            grid_spec=pl.GridSpec(
                grid=grid,
                in_specs=[
                    tiled_x,             # x        (batch-tiled, double-buffered)
                    resident((E, P)),    # w1       (VMEM-resident)
                    resident((1, P)),    # b1
                    resident((P, P)),    # w2
                    resident((1, P)),    # b2
                    resident((1, P)),    # gamma
                    resident((1, P)),    # beta
                ],
                out_specs=tiled_o,
            ),
            compiler_params=pltpu.CompilerParams(
                dimension_semantics=("parallel",),
                vmem_limit_bytes=vmem_limit,
            ),
            cost_estimate=cost,
        )(x, w1, b1, w2, b2, gamma, beta)

    # TODO(synk): for very large E/P (weight bytes approaching ~20-30 MiB on
    # v7x) add a K grid axis over E with an f32 VMEM accumulator ("arbitrary",
    # reduction axis last) instead of keeping w1/w2 fully resident.
    try:
        return _build_and_run(single_buffer_weights=True)
    except Exception:
        # Fallback if this Pallas build rejects Buffered(1) on inputs.
        return _build_and_run(single_buffer_weights=False)


def reference(x, w1, b1, w2, b2, gamma, beta):
    xf = x.astype(jnp.float32)
    projected = xf @ w1.astype(jnp.float32) + b1
    h = jax.nn.gelu(projected, approximate=False)
    h = h @ w2.astype(jnp.float32) + b2
    y = h + projected
    mean = jnp.mean(y, axis=-1, keepdims=True)
    var = jnp.mean(jnp.square(y - mean), axis=-1, keepdims=True)
    y = (y - mean) * lax.rsqrt(var + 1e-5)
    return y * gamma + beta


if __name__ == "__main__":
    # Small but grid-exercising shapes: batch=256, embedding_dim=64,
    # projection_dim=128. The auto tile picker chooses block_b=128 ->
    # grid=(2,), so the pipeline and (on v7x) both TensorCores are exercised.
    B, E, P = 256, 64, 128

    key = jax.random.PRNGKey(0)
    kx, k1, k2, k3, k4 = jax.random.split(key, 5)

    x = jax.random.normal(kx, (B, E), dtype=jnp.float32)

    # Deterministic synthetic parameters (PyTorch-like scale U(-1/sqrt(fan_in), ..))
    w1 = jax.random.uniform(k1, (E, P), jnp.float32, -1.0, 1.0) / jnp.sqrt(E)
    b1 = jax.random.uniform(k2, (1, P), jnp.float32, -1.0, 1.0) / jnp.sqrt(E)
    w2 = jax.random.uniform(k3, (P, P), jnp.float32, -1.0, 1.0) / jnp.sqrt(P)
    b2 = jax.random.uniform(k4, (1, P), jnp.float32, -1.0, 1.0) / jnp.sqrt(P)
    gamma = jnp.ones((1, P), jnp.float32)
    beta = jnp.zeros((1, P), jnp.float32)

    out = projection_head(x, w1, b1, w2, b2, gamma, beta)
    out = jax.block_until_ready(out)

    ref = reference(x, w1, b1, w2, b2, gamma, beta)
    assert out.shape == (B, P)
    assert jnp.allclose(out, ref, atol=1e-4, rtol=1e-4)

    print("KERNEL_OK")
</pallas_src>

<mosaic_0001>
module attributes {stable_mosaic.version = 11 : i64} {
  func.func @projection_head_kernel(%arg0: i32, %arg1: memref<128x64xf32, #tpu.memory_space<vmem>>, %arg2: memref<64x128xf32, #tpu.memory_space<vmem>>, %arg3: memref<1x128xf32, #tpu.memory_space<vmem>>, %arg4: memref<128x128xf32, #tpu.memory_space<vmem>>, %arg5: memref<1x128xf32, #tpu.memory_space<vmem>>, %arg6: memref<1x128xf32, #tpu.memory_space<vmem>>, %arg7: memref<1x128xf32, #tpu.memory_space<vmem>>, %arg8: memref<128x128xf32, #tpu.memory_space<vmem>>) attributes {dimension_semantics = [#tpu.dimension_semantics<parallel>], iteration_bounds = array<i64: 2>, scalar_prefetch = 0 : i64, scratch_operands = 0 : i64, tpu.core_type = #tpu.core_type<tc>, window_params = [{transform_indices = @transform_0, window_bounds = array<i64: 128, 64>}, {pipeline_mode = #tpu.pipeline_mode<synchronous>, transform_indices = @transform_1, window_bounds = array<i64: 64, 128>}, {pipeline_mode = #tpu.pipeline_mode<synchronous>, transform_indices = @transform_2, window_bounds = array<i64: 1, 128>}, {pipeline_mode = #tpu.pipeline_mode<synchronous>, transform_indices = @transform_3, window_bounds = array<i64: 128, 128>}, {pipeline_mode = #tpu.pipeline_mode<synchronous>, transform_indices = @transform_4, window_bounds = array<i64: 1, 128>}, {pipeline_mode = #tpu.pipeline_mode<synchronous>, transform_indices = @transform_5, window_bounds = array<i64: 1, 128>}, {pipeline_mode = #tpu.pipeline_mode<synchronous>, transform_indices = @transform_6, window_bounds = array<i64: 1, 128>}, {transform_indices = @transform_7, window_bounds = array<i64: 128, 128>}]} {
    %c0 = arith.constant 0 : index
    %c0_0 = arith.constant 0 : index
    %0 = vector.load %arg1[%c0, %c0_0] : memref<128x64xf32, #tpu.memory_space<vmem>>, vector<128x64xf32>
    %c0_1 = arith.constant 0 : index
    %c0_2 = arith.constant 0 : index
    %1 = vector.load %arg2[%c0_1, %c0_2] : memref<64x128xf32, #tpu.memory_space<vmem>>, vector<64x128xf32>
    %cst = arith.constant dense<0.000000e+00> : vector<128x128xf32>
    %2 = tpu.matmul %0, %1, %cst {dimension_numbers = #tpu.dot_dimension_numbers<[1], [0], [0], [1], [0, 0, 1, 1], [], []>} : vector<128x64xf32>, vector<64x128xf32>, vector<128x128xf32> -> vector<128x128xf32>
    %c0_3 = arith.constant 0 : index
    %c0_4 = arith.constant 0 : index
    %3 = vector.load %arg3[%c0_3, %c0_4] : memref<1x128xf32, #tpu.memory_space<vmem>>, vector<1x128xf32>
    %4 = vector.broadcast %3 : vector<1x128xf32> to vector<128x128xf32>
    %5 = arith.addf %2, %4 : vector<128x128xf32>
    %cst_5 = arith.constant 5.000000e-01 : f32
    %6 = vector.broadcast %cst_5 : f32 to vector<128x128xf32>
    %7 = arith.mulf %6, %5 : vector<128x128xf32>
    %cst_6 = arith.constant 2.000000e+00 : f32
    %8 = math.sqrt %cst_6 : f32
    %cst_7 = arith.constant 1.000000e+00 : f32
    %9 = arith.divf %cst_7, %8 : f32
    %10 = vector.broadcast %9 : f32 to vector<128x128xf32>
    %11 = arith.mulf %5, %10 : vector<128x128xf32>
    %12 = math.erf %11 : vector<128x128xf32>
    %cst_8 = arith.constant 1.000000e+00 : f32
    %13 = vector.broadcast %cst_8 : f32 to vector<128x128xf32>
    %14 = arith.addf %13, %12 : vector<128x128xf32>
    %15 = arith.mulf %7, %14 : vector<128x128xf32>
    %c0_9 = arith.constant 0 : index
    %c0_10 = arith.constant 0 : index
    %16 = vector.load %arg4[%c0_9, %c0_10] : memref<128x128xf32, #tpu.memory_space<vmem>>, vector<128x128xf32>
    %cst_11 = arith.constant dense<0.000000e+00> : vector<128x128xf32>
    %17 = tpu.matmul %15, %16, %cst_11 {dimension_numbers = #tpu.dot_dimension_numbers<[1], [0], [0], [1], [0, 0, 1, 1], [], []>} : vector<128x128xf32>, vector<128x128xf32>, vector<128x128xf32> -> vector<128x128xf32>
    %c0_12 = arith.constant 0 : index
    %c0_13 = arith.constant 0 : index
    %18 = vector.load %arg5[%c0_12, %c0_13] : memref<1x128xf32, #tpu.memory_space<vmem>>, vector<1x128xf32>
    %19 = vector.broadcast %18 : vector<1x128xf32> to vector<128x128xf32>
    %20 = arith.addf %17, %19 : vector<128x128xf32>
    %21 = arith.addf %20, %5 : vector<128x128xf32>
    %cst_14 = arith.constant dense<0.000000e+00> : vector<128xf32>
    %22 = vector.multi_reduction <add>, %21, %cst_14 [1] : vector<128x128xf32> to vector<128xf32>
    %23 = vector.shape_cast %22 : vector<128xf32> to vector<128x1xf32>
    %24 = arith.mulf %21, %21 : vector<128x128xf32>
    %cst_15 = arith.constant dense<0.000000e+00> : vector<128xf32>
    %25 = vector.multi_reduction <add>, %24, %cst_15 [1] : vector<128x128xf32> to vector<128xf32>
    %26 = vector.shape_cast %25 : vector<128xf32> to vector<128x1xf32>
    %cst_16 = arith.constant 7.812500e-03 : f32
    %27 = vector.broadcast %cst_16 : f32 to vector<128x1xf32>
    %28 = arith.mulf %23, %27 : vector<128x1xf32>
    %cst_17 = arith.constant 7.812500e-03 : f32
    %29 = vector.broadcast %cst_17 : f32 to vector<128x1xf32>
    %30 = arith.mulf %26, %29 : vector<128x1xf32>
    %31 = arith.mulf %28, %28 : vector<128x1xf32>
    %32 = arith.subf %30, %31 : vector<128x1xf32>
    %cst_18 = arith.constant 0.000000e+00 : f32
    %33 = vector.broadcast %cst_18 : f32 to vector<128x1xf32>
    %34 = arith.maximumf %32, %33 : vector<128x1xf32>
    %35 = vector.broadcast %28 : vector<128x1xf32> to vector<128x128xf32>
    %36 = arith.subf %21, %35 : vector<128x128xf32>
    %cst_19 = arith.constant 9.99999974E-6 : f32
    %37 = vector.broadcast %cst_19 : f32 to vector<128x1xf32>
    %38 = arith.addf %34, %37 : vector<128x1xf32>
    %39 = math.rsqrt %38 : vector<128x1xf32>
    %40 = vector.broadcast %39 : vector<128x1xf32> to vector<128x128xf32>
    %41 = arith.mulf %36, %40 : vector<128x128xf32>
    %c0_20 = arith.constant 0 : index
    %c0_21 = arith.constant 0 : index
    %42 = vector.load %arg6[%c0_20, %c0_21] : memref<1x128xf32, #tpu.memory_space<vmem>>, vector<1x128xf32>
    %43 = vector.broadcast %42 : vector<1x128xf32> to vector<128x128xf32>
    %44 = arith.mulf %41, %43 : vector<128x128xf32>
    %c0_22 = arith.constant 0 : index
    %c0_23 = arith.constant 0 : index
    %45 = vector.load %arg7[%c0_22, %c0_23] : memref<1x128xf32, #tpu.memory_space<vmem>>, vector<1x128xf32>
    %46 = vector.broadcast %45 : vector<1x128xf32> to vector<128x128xf32>
    %47 = arith.addf %44, %46 : vector<128x128xf32>
    %c0_24 = arith.constant 0 : index
    %c0_25 = arith.constant 0 : index
    %48 = vector.load %arg8[%c0_24, %c0_25] : memref<128x128xf32, #tpu.memory_space<vmem>>, vector<128x128xf32>
    tpu.vector_store %arg8[%c0_24, %c0_25], %47 {strides = array<i32>} : memref<128x128xf32, #tpu.memory_space<vmem>>, vector<128x128xf32>,
    return
  }
  func.func @transform_0(%arg0: i32) -> (i32, i32) {
    %c0_i32 = arith.constant 0 : i32
    %c0_i32_0 = arith.constant 0 : i32
    return %arg0, %c0_i32 : i32, i32
  }
  func.func @transform_1(%arg0: i32) -> (i32, i32) {
    %c0_i32 = arith.constant 0 : i32
    %c0_i32_0 = arith.constant 0 : i32
    %c0_i32_1 = arith.constant 0 : i32
    return %c0_i32, %c0_i32_0 : i32, i32
  }
  func.func @transform_2(%arg0: i32) -> (i32, i32) {
    %c0_i32 = arith.constant 0 : i32
    %c0_i32_0 = arith.constant 0 : i32
    %c0_i32_1 = arith.constant 0 : i32
    return %c0_i32, %c0_i32_0 : i32, i32
  }
  func.func @transform_3(%arg0: i32) -> (i32, i32) {
    %c0_i32 = arith.constant 0 : i32
    %c0_i32_0 = arith.constant 0 : i32
    %c0_i32_1 = arith.constant 0 : i32
    return %c0_i32, %c0_i32_0 : i32, i32
  }
  func.func @transform_4(%arg0: i32) -> (i32, i32) {
    %c0_i32 = arith.constant 0 : i32
    %c0_i32_0 = arith.constant 0 : i32
    %c0_i32_1 = arith.constant 0 : i32
    return %c0_i32, %c0_i32_0 : i32, i32
  }
  func.func @transform_5(%arg0: i32) -> (i32, i32) {
    %c0_i32 = arith.constant 0 : i32
    %c0_i32_0 = arith.constant 0 : i32
    %c0_i32_1 = arith.constant 0 : i32
    return %c0_i32, %c0_i32_0 : i32, i32
  }
  func.func @transform_6(%arg0: i32) -> (i32, i32) {
    %c0_i32 = arith.constant 0 : i32
    %c0_i32_0 = arith.constant 0 : i32
    %c0_i32_1 = arith.constant 0 : i32
    return %c0_i32, %c0_i32_0 : i32, i32
  }
  func.func @transform_7(%arg0: i32) -> (i32, i32) {
    %c0_i32 = arith.constant 0 : i32
    %c0_i32_0 = arith.constant 0 : i32
    return %arg0, %c0_i32 : i32, i32
  }
}

module attributes {stable_mosaic.version = 11 : i64} {
  func.func @projection_head_kernel(%arg0: i32, %arg1: memref<128x64xf32, #tpu.memory_space<vmem>>, %arg2: memref<64x128xf32, #tpu.memory_space<vmem>>, %arg3: memref<1x128xf32, #tpu.memory_space<vmem>>, %arg4: memref<128x128xf32, #tpu.memory_space<vmem>>, %arg5: memref<1x128xf32, #tpu.memory_space<vmem>>, %arg6: memref<1x128xf32, #tpu.memory_space<vmem>>, %arg7: memref<1x128xf32, #tpu.memory_space<vmem>>, %arg8: memref<128x128xf32, #tpu.memory_space<vmem>>) attributes {dimension_semantics = [#tpu.dimension_semantics<parallel>], iteration_bounds = array<i64: 2>, scalar_prefetch = 0 : i64, scratch_operands = 0 : i64, tpu.core_type = #tpu.core_type<tc>, window_params = [{transform_indices = @transform_0, window_bounds = array<i64: 128, 64>}, {pipeline_mode = #tpu.pipeline_mode<synchronous>, transform_indices = @transform_1, window_bounds = array<i64: 64, 128>}, {pipeline_mode = #tpu.pipeline_mode<synchronous>, transform_indices = @transform_2, window_bounds = array<i64: 1, 128>}, {pipeline_mode = #tpu.pipeline_mode<synchronous>, transform_indices = @transform_3, window_bounds = array<i64: 128, 128>}, {pipeline_mode = #tpu.pipeline_mode<synchronous>, transform_indices = @transform_4, window_bounds = array<i64: 1, 128>}, {pipeline_mode = #tpu.pipeline_mode<synchronous>, transform_indices = @transform_5, window_bounds = array<i64: 1, 128>}, {pipeline_mode = #tpu.pipeline_mode<synchronous>, transform_indices = @transform_6, window_bounds = array<i64: 1, 128>}, {transform_indices = @transform_7, window_bounds = array<i64: 128, 128>}]} {
    %c0 = arith.constant 0 : index
    %c0_0 = arith.constant 0 : index
    %0 = vector.load %arg1[%c0, %c0_0] : memref<128x64xf32, #tpu.memory_space<vmem>>, vector<128x64xf32>
    %c0_1 = arith.constant 0 : index
    %c0_2 = arith.constant 0 : index
    %1 = vector.load %arg2[%c0_1, %c0_2] : memref<64x128xf32, #tpu.memory_space<vmem>>, vector<64x128xf32>
    %cst = arith.constant dense<0.000000e+00> : vector<128x128xf32>
    %2 = tpu.matmul %0, %1, %cst {dimension_numbers = #tpu.dot_dimension_numbers<[1], [0], [0], [1], [0, 0, 1, 1], [], []>} : vector<128x64xf32>, vector<64x128xf32>, vector<128x128xf32> -> vector<128x128xf32>
    %c0_3 = arith.constant 0 : index
    %c0_4 = arith.constant 0 : index
    %3 = vector.load %arg3[%c0_3, %c0_4] : memref<1x128xf32, #tpu.memory_space<vmem>>, vector<1x128xf32>
    %4 = vector.broadcast %3 : vector<1x128xf32> to vector<128x128xf32>
    %5 = arith.addf %2, %4 : vector<128x128xf32>
    %cst_5 = arith.constant 5.000000e-01 : f32
    %6 = vector.broadcast %cst_5 : f32 to vector<128x128xf32>
    %7 = arith.mulf %6, %5 : vector<128x128xf32>
    %cst_6 = arith.constant 2.000000e+00 : f32
    %8 = math.sqrt %cst_6 : f32
    %cst_7 = arith.constant 1.000000e+00 : f32
    %9 = arith.divf %cst_7, %8 : f32
    %10 = vector.broadcast %9 : f32 to vector<128x128xf32>
    %11 = arith.mulf %5, %10 : vector<128x128xf32>
    %12 = math.erf %11 : vector<128x128xf32>
    %cst_8 = arith.constant 1.000000e+00 : f32
    %13 = vector.broadcast %cst_8 : f32 to vector<128x128xf32>
    %14 = arith.addf %13, %12 : vector<128x128xf32>
    %15 = arith.mulf %7, %14 : vector<128x128xf32>
    %c0_9 = arith.constant 0 : index
    %c0_10 = arith.constant 0 : index
    %16 = vector.load %arg4[%c0_9, %c0_10] : memref<128x128xf32, #tpu.memory_space<vmem>>, vector<128x128xf32>
    %cst_11 = arith.constant dense<0.000000e+00> : vector<128x128xf32>
    %17 = tpu.matmul %15, %16, %cst_11 {dimension_numbers = #tpu.dot_dimension_numbers<[1], [0], [0], [1], [0, 0, 1, 1], [], []>} : vector<128x128xf32>, vector<128x128xf32>, vector<128x128xf32> -> vector<128x128xf32>
    %c0_12 = arith.constant 0 : index
    %c0_13 = arith.constant 0 : index
    %18 = vector.load %arg5[%c0_12, %c0_13] : memref<1x128xf32, #tpu.memory_space<vmem>>, vector<1x128xf32>
    %19 = vector.broadcast %18 : vector<1x128xf32> to vector<128x128xf32>
    %20 = arith.addf %17, %19 : vector<128x128xf32>
    %21 = arith.addf %20, %5 : vector<128x128xf32>
    %cst_14 = arith.constant dense<0.000000e+00> : vector<128xf32>
    %22 = vector.multi_reduction <add>, %21, %cst_14 [1] : vector<128x128xf32> to vector<128xf32>
    %23 = vector.shape_cast %22 : vector<128xf32> to vector<128x1xf32>
    %24 = arith.mulf %21, %21 : vector<128x128xf32>
    %cst_15 = arith.constant dense<0.000000e+00> : vector<128xf32>
    %25 = vector.multi_reduction <add>, %24, %cst_15 [1] : vector<128x128xf32> to vector<128xf32>
    %26 = vector.shape_cast %25 : vector<128xf32> to vector<128x1xf32>
    %cst_16 = arith.constant 7.812500e-03 : f32
    %27 = vector.broadcast %cst_16 : f32 to vector<128x1xf32>
    %28 = arith.mulf %23, %27 : vector<128x1xf32>
    %cst_17 = arith.constant 7.812500e-03 : f32
    %29 = vector.broadcast %cst_17 : f32 to vector<128x1xf32>
    %30 = arith.mulf %26, %29 : vector<128x1xf32>
    %31 = arith.mulf %28, %28 : vector<128x1xf32>
    %32 = arith.subf %30, %31 : vector<128x1xf32>
    %cst_18 = arith.constant 0.000000e+00 : f32
    %33 = vector.broadcast %cst_18 : f32 to vector<128x1xf32>
    %34 = arith.maximumf %32, %33 : vector<128x1xf32>
    %35 = vector.broadcast %28 : vector<128x1xf32> to vector<128x128xf32>
    %36 = arith.subf %21, %35 : vector<128x128xf32>
    %cst_19 = arith.constant 9.99999974E-6 : f32
    %37 = vector.broadcast %cst_19 : f32 to vector<128x1xf32>
    %38 = arith.addf %34, %37 : vector<128x1xf32>
    %39 = math.rsqrt %38 : vector<128x1xf32>
    %40 = vector.broadcast %39 : vector<128x1xf32> to vector<128x128xf32>
    %41 = arith.mulf %36, %40 : vector<128x128xf32>
    %c0_20 = arith.constant 0 : index
    %c0_21 = arith.constant 0 : index
    %42 = vector.load %arg6[%c0_20, %c0_21] : memref<1x128xf32, #tpu.memory_space<vmem>>, vector<1x128xf32>
    %43 = vector.broadcast %42 : vector<1x128xf32> to vector<128x128xf32>
    %44 = arith.mulf %41, %43 : vector<128x128xf32>
    %c0_22 = arith.constant 0 : index
    %c0_23 = arith.constant 0 : index
    %45 = vector.load %arg7[%c0_22, %c0_23] : memref<1x128xf32, #tpu.memory_space<vmem>>, vector<1x128xf32>
    %46 = vector.broadcast %45 : vector<1x128xf32> to vector<128x128xf32>
    %47 = arith.addf %44, %46 : vector<128x128xf32>
    %c0_24 = arith.constant 0 : index
    %c0_25 = arith.constant 0 : index
    %48 = vector.load %arg8[%c0_24, %c0_25] : memref<128x128xf32, #tpu.memory_space<vmem>>, vector<128x128xf32>
    tpu.vector_store %arg8[%c0_24, %c0_25], %47 {strides = array<i32>} : memref<128x128xf32, #tpu.memory_space<vmem>>, vector<128x128xf32>,
    return
  }
  func.func @transform_0(%arg0: i32) -> (i32, i32) {
    %c0_i32 = arith.constant 0 : i32
    %c0_i32_0 = arith.constant 0 : i32
    return %arg0, %c0_i32 : i32, i32
  }
  func.func @transform_1(%arg0: i32) -> (i32, i32) {
    %c0_i32 = arith.constant 0 : i32
    %c0_i32_0 = arith.constant 0 : i32
    %c0_i32_1 = arith.constant 0 : i32
    return %c0_i32, %c0_i32_0 : i32, i32
  }
  func.func @transform_2(%arg0: i32) -> (i32, i32) {
    %c0_i32 = arith.constant 0 : i32
    %c0_i32_0 = arith.constant 0 : i32
    %c0_i32_1 = arith.constant 0 : i32
    return %c0_i32, %c0_i32_0 : i32, i32
  }
  func.func @transform_3(%arg0: i32) -> (i32, i32) {
    %c0_i32 = arith.constant 0 : i32
    %c0_i32_0 = arith.constant 0 : i32
    %c0_i32_1 = arith.constant 0 : i32
    return %c0_i32, %c0_i32_0 : i32, i32
  }
  func.func @transform_4(%arg0: i32) -> (i32, i32) {
    %c0_i32 = arith.constant 0 : i32
    %c0_i32_0 = arith.constant 0 : i32
    %c0_i32_1 = arith.constant 0 : i32
    return %c0_i32, %c0_i32_0 : i32, i32
  }
  func.func @transform_5(%arg0: i32) -> (i32, i32) {
    %c0_i32 = arith.constant 0 : i32
    %c0_i32_0 = arith.constant 0 : i32
    %c0_i32_1 = arith.constant 0 : i32
    return %c0_i32, %c0_i32_0 : i32, i32
  }
  func.func @transform_6(%arg0: i32) -> (i32, i32) {
    %c0_i32 = arith.constant 0 : i32
    %c0_i32_0 = arith.constant 0 : i32
    %c0_i32_1 = arith.constant 0 : i32
    return %c0_i32, %c0_i32_0 : i32, i32
  }
  func.func @transform_7(%arg0: i32) -> (i32, i32) {
    %c0_i32 = arith.constant 0 : i32
    %c0_i32_0 = arith.constant 0 : i32
    return %arg0, %c0_i32 : i32, i32
  }
}

</mosaic_0001>

<bundles_post_ra>
// kernel: tpu_custom_call.1
= control target key start
LH: loop header
LB: loop body
LE: loop exit
PB: predicated region body
PF: predicated region fallthrough
CT: control target
= control target key end

     0   :  { %12 = vsyncpa [#allocation3], 0  ;;  %s2118_s0 = inlined_call_operand.vmem [shape: f32[256,64], index: 0, kind: input, shape index: {}]   ;;  %s2119_s1 = inlined_call_operand.vmem [shape: f32[64,128], index: 1, kind: input, shape index: {}]   ;;  %s2120_s2 = inlined_call_operand.vmem [shape: f32[1,128], index: 2, kind: input, shape index: {}]   ;;  %s2121_s3 = inlined_call_operand.vmem [shape: f32[128,128], index: 3, kind: input, shape index: {}]   ;;  %s2122_s4 = inlined_call_operand.vmem [shape: f32[1,128], index: 4, kind: input, shape index: {}]   ;;  %s2123_s5 = inlined_call_operand.vmem [shape: f32[1,128], index: 5, kind: input, shape index: {}]   ;;  %s2124_s6 = inlined_call_operand.vmem [shape: f32[1,128], index: 6, kind: input, shape index: {}]   ;;  %s2125_s7 = inlined_call_operand.hbm [shape: f32[256,128], index: 7, kind: output, shape index: {}]  }
   0x1   :  { %14 = vsyncpa [#allocation3 + $0x1], 0  ;;  %s1558_s24 = smov 0   ;;  %s1560_s25 = smov 0  }
   0x2   :  { %s1562_s26 = smov 0   ;;  %s1564_s27 = smov 0  }
   0x3 LB: > { %s1579_s28 = sadd.s32 4294967295, %s1513_s27   ;;  %s1131_s29 = sadd.s32 4294967294, %s1513_s27   ;;  %s1513_s27 = sphi %s1564_s27, %s2131_s27   ;;  %s1509_s26 = sphi %s1562_s26, %s2130_s26   ;;  %s1505_s25 = sphi %s1560_s25, %s2129_s25   ;;  %s1501_s24 = sphi %s1558_s24, %s2128_s24  }
   0x4   : > { %s1583_s30 = sadd.s32 1, %s1513_s27   ;;  %s179_s8 = sadd.s32 1, %s1509_s26 }
   0x5   : > { %s176_s9 = ssub.s32 %s1513_s27, %s1583_s30  ;;  %p189_p0 = scmp.ne.s32.totalorder %s1509_s26, %s1505_s25 }
   0x6   : > { %p177_p1 = scmp.eq.s32.totalorder %s176_s9, 0  ;;  %p190_p2 = scmp.eq.s32.totalorder %s1579_s28, 1 }
   0x7   : > { %p195_p3 = scmp.ne.s32.totalorder %s1505_s25, %s1501_s24  ;;  %p196_p4 = scmp.eq.s32.totalorder %s1131_s29, 1 }
   0x8   : > { %s1594_s10 = scalar_select %p177_p1, %s1509_s26, %s179_s8  }
   0x9   : > { %p1596_p5 = por %p190_p2, %p189_p0  ;;  %p1600_p6 = por %p196_p4, %p195_p3 }
   0xa   : > { %p1134_p7 = scmp.ge.s32.totalorder %s1513_s27, 1  ;;  %p241_p8 = scmp.lt.s32.totalorder %s1513_s27, 3 }
   0xc   : > { %p242_p9 = pnand %p1134_p7, %p241_p8 }
   0xd   : > { %s1136_s17 = sshll.u32 (!%p242_p9), %s1579_s28, 4  ;;  %s270_s14 = sand.u32 (!%p242_p9), 1, %s1505_s25  }
   0xe   : > { %245 = sbr.rel (%p242_p9) target bundleno = 693 (0x2b5), region = 48  ;;  %p274_p10 = scmp.lt.s32.totalorder (!%p242_p9), %s1136_s17, 31 }
   0xf   : > { %s1135_s19 = sshll.u32 (!%p242_p9), %s270_s14, 7  ;;  %s1163_s21 = sshll.u32 (!%p242_p9), %s1579_s28, 11 }
  0x10   : > { %s2069_s8 = scalar_lea.hbm (!%p242_p9), %s2125_s7, %s1163_s21  ;;  %s2078_s28 = scalar_lea.sflag (!%p242_p9), [#allocation3], %s270_s14 }
  0x11   : > { %s1515_s13 = smov (!%p242_p9), [#allocation2]  }
  0x12   : > { %s1457_s15 = sshll.u32 (!%p242_p9), %s1515_s13, 4  ;;  %s1458_s15 = int_to_ptr.vmem [resolvable:$false] %s1457_s15 }
  0x13   : > { %v303_v0 = vld [vmem:[%s2119_s1 + $0x38] sm:$0xff]  ;;  %v302_v1 = vld [vmem:[%s2119_s1 + $0x30] sm:$0xff]  ;;  %v301_v2 = vld [vmem:[%s2119_s1 + $0x28] sm:$0xff]  ;;  %s2133_s17 = smov (!%p274_p10, %s1136_s17), 31  ;;  %vm311_vm0 = vcmask 523264   ;;  %s1459_s16 = scalar_lea.vmem %s1458_s15, 4096 }
  0x14   : > { %1220 = vmatprep.subr.mxu0 %v303_v0  ;;  %v600_v3 = vld [vmem:[%s2121_s3 + $0x78] sm:$0xff]  ;;  %v300_v4 = vld [vmem:[%s2119_s1 + $0x20] sm:$0xff]  ;;  %v599_v5 = vld [vmem:[%s2121_s3 + $0x70] sm:$0xff]  ;;  %s1137_s9 = sshll.u32 %s2133_s17, 3 }
  0x15   : > { %1221 = vmatpush3.msra.mxu0 %v303_v0  ;;  %1316 = vmatprep.subr.mxu1 %v600_v3  ;;  %v299_v6 = vld [vmem:[%s2119_s1 + $0x18] sm:$0xff]  ;;  %s1631_s18 = scalar_lea.vmem %s2118_s0, %s1137_s9  ;;  %v598_v7 = vld [vmem:[%s2121_s3 + $0x68] sm:$0xff]  ;;  %v298_v9 = vld [vmem:[%s2119_s1 + $0x10] sm:$0xff] }
  0x16   : > { %1222 = vmatprep.subr.mxu0 %v302_v1  ;;  %1332 = vmatpush3.msra.mxu1 %v600_v3  ;;  %v280_v8 = vld [vmem:[%s1631_s18] sm:$0xff]  ;;  %v297_v11 = vld [vmem:[%s2119_s1 + $0x8] sm:$0xff]  ;;  %v282_v14 = vld [vmem:[%s1631_s18 + $0x10] sm:$0xff] }
  0x17   : > { %1223 = vmatpush3.msra.mxu0 %v302_v1  ;;  %1317 = vmatprep.subr.mxu1 %v599_v5  ;;  %v597_v10 = vld [vmem:[%s2121_s3 + $0x60] sm:$0xff]  ;;  %v281_v13 = vld [vmem:[%s1631_s18 + $0x8] sm:$0xff]  ;;  %v283_v15 = vld [vmem:[%s1631_s18 + $0x18] sm:$0xff] }
  0x18   : > { %1224 = vmatprep.subr.mxu0 %v301_v2  ;;  %1333 = vmatpush3.msra.mxu1 %v599_v5  ;;  %v296_v12 = vld [vmem:[%s2119_s1] sm:$0xff]  ;;  %v285_v17 = vld [vmem:[%s1631_s18 + $0x28] sm:$0xff]  ;;  %v286_v18 = vld [vmem:[%s1631_s18 + $0x30] sm:$0xff] }
  0x19   : > { %1225 = vmatpush3.msra.mxu0 %v301_v2  ;;  %1318 = vmatprep.subr.mxu1 %v598_v7  ;;  %v284_v16 = vld [vmem:[%s1631_s18 + $0x20] sm:$0xff]  ;;  %v287_v19 = vld [vmem:[%s1631_s18 + $0x38] sm:$0xff]  ;;  %v289_v21 = vld [vmem:[%s1631_s18 + $0x48] sm:$0xff] }
  0x1a   : > { %1226 = vmatprep.subr.mxu0 %v300_v4  ;;  %1236 = vmatprep.mubr.msk.f32.mxu0 %vm311_vm0, %v280_v8  ;;  %v288_v20 = vld [vmem:[%s1631_s18 + $0x40] sm:$0xff]  ;;  %v290_v22 = vld [vmem:[%s1631_s18 + $0x50] sm:$0xff]  ;;  %v291_v23 = vld [vmem:[%s1631_s18 + $0x58] sm:$0xff] }
  0x1b   : > { %1227 = vmatpush3.msra.mxu0 %v300_v4  ;;  %1334 = vmatpush3.msra.mxu1 %v598_v7  ;;  %v292_v24 = vld [vmem:[%s1631_s18 + $0x60] sm:$0xff]  ;;  %v293_v25 = vld [vmem:[%s1631_s18 + $0x68] sm:$0xff]  ;;  %v294_v26 = vld [vmem:[%s1631_s18 + $0x70] sm:$0xff] }
  0x1c   : > { %1228 = vmatprep.subr.mxu0 %v299_v6  ;;  %1319 = vmatprep.subr.mxu1 %v597_v10  ;;  %v295_v27 = vld [vmem:[%s1631_s18 + $0x78] sm:$0xff]  ;;  %v595_v29 = vld [vmem:[%s2121_s3 + $0x50] sm:$0xff]  ;;  %v594_v30 = vld [vmem:[%s2121_s3 + $0x48] sm:$0xff]  ;;  %s1964_s18 = scalar_lea.vmem [#allocation2], %s1135_s19 }
  0x1d   : > { %1229 = vmatpush3.msra.mxu0 %v299_v6  ;;  %1335 = vmatpush3.msra.mxu1 %v597_v10  ;;  %v596_v28 = vld [vmem:[%s2121_s3 + $0x58] sm:$0xff]  ;;  %v593_v31 = vld [vmem:[%s2121_s3 + $0x40] sm:$0xff]  ;;  %v591_v33 = vld [vmem:[%s2121_s3 + $0x30] sm:$0xff]  ;;  %s1069_s22 = sshll.u32 %s1964_s18, 4  ;;  %s2071_s22 = int_to_ptr.vmem [resolvable:$true] %s1069_s22 }
  0x1e   : > { %1230 = vmatprep.subr.mxu0 %v298_v9  ;;  %1320 = vmatprep.subr.mxu1 %v596_v28  ;;  %v592_v32 = vld [vmem:[%s2121_s3 + $0x38] sm:$0xff]  ;;  %v590_v34 = vld [vmem:[%s2121_s3 + $0x28] sm:$0xff]  ;;  %v589_v35 = vld [vmem:[%s2121_s3 + $0x20] sm:$0xff]  ;;  %s1453_s9 = scalar_lea.vmem %s2071_s22, 2048  ;;  %p1460_p0 = scmp.lt.s32.totalorder %s2071_s22, %s1458_s15 }
  0x1f   : > { %1231 = vmatpush3.msra.mxu0 %v298_v9  ;;  %1336 = vmatpush3.msra.mxu1 %v596_v28  ;;  %v588_v36 = vld [vmem:[%s2121_s3 + $0x18] sm:$0xff]  ;;  %v587_v37 = vld [vmem:[%s2121_s3 + $0x10] sm:$0xff]  ;;  %v586_v38 = vld [vmem:[%s2121_s3 + $0x8] sm:$0xff]  ;;  %p1454_p11 = scmp.ne.s32.totalorder %s2071_s22, %s1453_s9  ;;  %p1461_p1 = scmp.lt.s32.totalorder %s1459_s16, %s1453_s9 }
  0x20   : > { %1232 = vmatprep.subr.mxu0 %v297_v11  ;;  %1321 = vmatprep.subr.mxu1 %v595_v29  ;;  %v585_v39 = vld [vmem:[%s2121_s3] sm:$0xff] }
  0x21   : > { %1233 = vmatpush3.msra.mxu0 %v297_v11  ;;  %1337 = vmatpush3.msra.mxu1 %v595_v29  ;;  %v1719_v40 = vld [vmem:[%s2120_s2] ss:$0 sm:$0xff]  ;;  %p1455_p12 = pnand %p1454_p11, %p1596_p5  ;;  %p1462_p2 = por %p1461_p1, %p1460_p0 }
  0x22   : > { %1234 = vmatprep.subr.mxu0 %v296_v12  ;;  %1322 = vmatprep.subr.mxu1 %v594_v30 }
  0x23   : > { %1235 = vmatpush3.msra.mxu0 %v296_v12  ;;  %1338 = vmatpush3.msra.mxu1 %v594_v30  ;;  %p1456_p13 = pneg %p1455_p12 }
  0x24   : > { %1237 = vmatmul.mubr.msk.f32.vlgmr.msra.gmra.mxu0 %vm311_vm0, %v281_v13  ;;  %1260 = vmatprep.subr.mxu0 %v600_v3 }
  0x25   : > { %1239 = vmatprep.mubr.msk.f32.mxu0 %vm311_vm0, %v282_v14  ;;  %1261 = vmatpush3.msra.mxu0 %v600_v3  ;;  %p1463_p3 = pnand %p1462_p2, %p1456_p13 }
  0x26   : > { %1262 = vmatprep.subr.mxu0 %v599_v5  ;;  %1323 = vmatprep.subr.mxu1 %v593_v31 }
  0x27   : > { %1263 = vmatpush3.msra.mxu0 %v599_v5  ;;  %1339 = vmatpush3.msra.mxu1 %v593_v31 }
  0x28   : > { %1240 = vmatmul.mubr.msk.f32.gmra.mxu0 %vm311_vm0, %v283_v15  ;;  %1264 = vmatprep.subr.mxu0 %v598_v7 }
  0x29   : > { %1242 = vmatprep.mubr.msk.f32.mxu0 %vm311_vm0, %v284_v16  ;;  %1265 = vmatpush3.msra.mxu0 %v598_v7 }
  0x2a   : > { %1266 = vmatprep.subr.mxu0 %v597_v10  ;;  %1324 = vmatprep.subr.mxu1 %v592_v32 }
  0x2b   : > { %1267 = vmatpush3.msra.mxu0 %v597_v10  ;;  %1340 = vmatpush3.msra.mxu1 %v592_v32 }
  0x2c   : > { %1243 = vmatmul.mubr.msk.f32.gmra.mxu0 %vm311_vm0, %v285_v17  ;;  %1268 = vmatprep.subr.mxu0 %v596_v28 }
  0x2d   : > { %1245 = vmatprep.mubr.msk.f32.mxu0 %vm311_vm0, %v286_v18  ;;  %1269 = vmatpush3.msra.mxu0 %v596_v28 }
  0x2e   : > { %1270 = vmatprep.subr.mxu0 %v595_v29  ;;  %1325 = vmatprep.subr.mxu1 %v591_v33 }
  0x2f   : > { %1271 = vmatpush3.msra.mxu0 %v595_v29  ;;  %1341 = vmatpush3.msra.mxu1 %v591_v33 }
  0x30   : > { %1246 = vmatmul.mubr.msk.f32.gmra.mxu0 %vm311_vm0, %v287_v19  ;;  %1272 = vmatprep.subr.mxu0 %v594_v30 }
  0x31   : > { %1248 = vmatprep.mubr.msk.f32.mxu0 %vm311_vm0, %v288_v20  ;;  %1273 = vmatpush3.msra.mxu0 %v594_v30 }
  0x32   : > { %1274 = vmatprep.subr.mxu0 %v593_v31  ;;  %1326 = vmatprep.subr.mxu1 %v590_v34 }
  0x33   : > { %1275 = vmatpush3.msra.mxu0 %v593_v31  ;;  %1342 = vmatpush3.msra.mxu1 %v590_v34 }
  0x34   : > { %1249 = vmatmul.mubr.msk.f32.gmra.mxu0 %vm311_vm0, %v289_v21  ;;  %1276 = vmatprep.subr.mxu0 %v592_v32 }
  0x35   : > { %1251 = vmatprep.mubr.msk.f32.mxu0 %vm311_vm0, %v290_v22  ;;  %1277 = vmatpush3.msra.mxu0 %v592_v32 }
  0x36   : > { %1278 = vmatprep.subr.mxu0 %v591_v33  ;;  %1327 = vmatprep.subr.mxu1 %v589_v35 }
  0x37   : > { %1279 = vmatpush3.msra.mxu0 %v591_v33  ;;  %1343 = vmatpush3.msra.mxu1 %v589_v35 }
  0x38   : > { %1252 = vmatmul.mubr.msk.f32.gmra.mxu0 %vm311_vm0, %v291_v23  ;;  %1280 = vmatprep.subr.mxu0 %v590_v34 }
  0x39   : > { %1254 = vmatprep.mubr.msk.f32.mxu0 %vm311_vm0, %v292_v24  ;;  %1281 = vmatpush3.msra.mxu0 %v590_v34 }
  0x3a   : > { %1282 = vmatprep.subr.mxu0 %v589_v35  ;;  %1328 = vmatprep.subr.mxu1 %v588_v36 }
  0x3b   : > { %1283 = vmatpush3.msra.mxu0 %v589_v35  ;;  %1344 = vmatpush3.msra.mxu1 %v588_v36 }
  0x3c   : > { %1255 = vmatmul.mubr.msk.f32.gmra.mxu0 %vm311_vm0, %v293_v25  ;;  %1284 = vmatprep.subr.mxu0 %v588_v36 }
  0x3d   : > { %1257 = vmatprep.mubr.msk.f32.mxu0 %vm311_vm0, %v294_v26  ;;  %1285 = vmatpush3.msra.mxu0 %v588_v36 }
  0x3e   : > { %1286 = vmatprep.subr.mxu0 %v587_v37  ;;  %1329 = vmatprep.subr.mxu1 %v587_v37 }
  0x3f   : > { %1287 = vmatpush3.msra.mxu0 %v587_v37  ;;  %1345 = vmatpush3.msra.mxu1 %v587_v37 }
  0x40   : > { %1258 = vmatmul.mubr.msk.f32.gmra.mxu0 %vm311_vm0, %v295_v27  ;;  %1288 = vmatprep.subr.mxu0 %v586_v38 }
  0x41   : > { %1330 = vmatprep.subr.mxu1 %v586_v38  ;;  %1289 = vmatpush3.msra.mxu0 %v586_v38 }
  0x42   : > { %1346 = vmatpush3.msra.mxu1 %v586_v38  ;;  %1290 = vmatprep.subr.mxu0 %v585_v39 }
  0x43   : > { %1331 = vmatprep.subr.mxu1 %v585_v39  ;;  %1291 = vmatpush3.msra.mxu0 %v585_v39 }
  0x44   : > { %1347 = vmatpush3.msra.mxu1 %v585_v39 }
  0xe4   : > { %v1238_v41 = vpop.f32.mrf.mxu0 }
  0xe5   : > { %v1722_v42 = vadd.f32 %v1238_v41, %v1719_v40 }
  0xe6   : > { %v426_v43 = vpop.f32.mrf.mxu0 }
  0xe7   : > { %v522_v44 = vmul.f32 0.70710677, %v1722_v42  ;;  %v1726_v45 = vadd.f32 %v1719_v40, %v426_v43  ;;  %v506_v14 = vmul.f32 0.5, %v1722_v42 }
  0xe8   : > { %v1241_v46 = vpop.f32.mrf.mxu0 }
  0xe9   : > { %1389 = verf.f32 %v522_v44  ;;  %v521_v47 = vmul.f32 0.70710677, %v1726_v45  ;;  %v1730_v48 = vadd.f32 %v1241_v46, %v1719_v40  ;;  %v505_v10 = vmul.f32 0.5, %v1726_v45 }
  0xea   : > { %v436_v49 = vpop.f32.mrf.mxu0 }
  0xeb   : > { %1391 = verf.f32 %v521_v47  ;;  %v524_v50 = vmul.f32 0.70710677, %v1730_v48  ;;  %v1734_v51 = vadd.f32 %v1719_v40, %v436_v49  ;;  %v508_v30 = vmul.f32 0.5, %v1730_v48 }
  0xec   : > { %v1244_v52 = vpop.f32.mrf.mxu0 }
  0xed   : > { %1393 = verf.f32 %v524_v50  ;;  %v523_v53 = vmul.f32 0.70710677, %v1734_v51  ;;  %v1738_v54 = vadd.f32 %v1244_v52, %v1719_v40  ;;  %v507_v27 = vmul.f32 0.5, %v1734_v51 }
  0xee   : > { %v446_v55 = vpop.f32.mrf.mxu0 }
  0xef   : > { %1395 = verf.f32 %v523_v53  ;;  %v526_v56 = vmul.f32 0.70710677, %v1738_v54  ;;  %v1742_v57 = vadd.f32 %v1719_v40, %v446_v55  ;;  %v510_v43 = vmul.f32 0.5, %v1738_v54 }
  0xf0   : > { %v1247_v58 = vpop.f32.mrf.mxu0 }
  0xf1   : > { %1397 = verf.f32 %v526_v56  ;;  %v525_v59 = vmul.f32 0.70710677, %v1742_v57  ;;  %v1746_v60 = vadd.f32 %v1247_v58, %v1719_v40  ;;  %v509_v46 = vmul.f32 0.5, %v1742_v57 }
  0xf2   : > { %v456_v61 = vpop.f32.mrf.mxu0 }
  0xf3   : > { %v528_v62 = vmul.f32 0.70710677, %v1746_v60  ;;  %v1750_v63 = vadd.f32 %v1719_v40, %v456_v61  ;;  %1399 = verf.f32 %v525_v59 }
  0xf4   : > { %v1250_v0 = vpop.f32.mrf.mxu0 }
  0xf5   : > { %1401 = verf.f32 %v528_v62  ;;  %v527_v1 = vmul.f32 0.70710677, %v1750_v63  ;;  %v1754_v2 = vadd.f32 %v1250_v0, %v1719_v40  ;;  %v511_v53 = vmul.f32 0.5, %v1750_v63 }
  0xf6   : > { %v1390_v3 = vpop.eup %1389  ;;  %v466_v4 = vpop.f32.mrf.mxu0  ;;  %v512_v0 = vmul.f32 0.5, %v1746_v60 }
  0xf7   : > { %1403 = verf.f32 %v527_v1  ;;  %v530_v5 = vmul.f32 0.70710677, %v1754_v2  ;;  %v554_v7 = vadd.f32 1.0, %v1390_v3  ;;  %v1758_v8 = vadd.f32 %v1719_v40, %v466_v4 }
  0xf8   : > { %v1392_v6 = vpop.eup %1391  ;;  %v1253_v9 = vpop.f32.mrf.mxu0  ;;  %v514_v3 = vmul.f32 0.5, %v1754_v2 }
  0xf9   : > { %1405 = verf.f32 %v530_v5  ;;  %v1762_v11 = vadd.f32 %v1253_v9, %v1719_v40  ;;  %v553_v12 = vadd.f32 1.0, %v1392_v6  ;;  %v529_v15 = vmul.f32 0.70710677, %v1758_v8 }
  0xfa   : > { %v1394_v13 = vpop.eup %1393  ;;  %v476_v16 = vpop.f32.mrf.mxu0  ;;  %v570_v21 = vmul.f32 %v554_v7, %v506_v14  ;;  %v513_v7 = vmul.f32 0.5, %v1758_v8 }
  0xfb   : > { %v532_v17 = vmul.f32 0.70710677, %v1762_v11  ;;  %v1768_v18 = vadd.f32 %v1719_v40, %v476_v16  ;;  %v569_v19 = vmul.f32 %v553_v12, %v505_v10  ;;  %1407 = verf.f32 %v529_v15 }
  0xfc   : > { %v1396_v20 = vpop.eup %1395  ;;  %v1256_v22 = vpop.f32.mrf.mxu0  ;;  %v556_v25 = vadd.f32 1.0, %v1394_v13  ;;  %v516_v10 = vmul.f32 0.5, %v1762_v11 }
  0xfd   : > { %1409 = verf.f32 %v532_v17  ;;  %v531_v23 = vmul.f32 0.70710677, %v1768_v18  ;;  %v1772_v24 = vadd.f32 %v1256_v22, %v1719_v40  ;;  %1292 = vmatprep.mubr.f32.mxu0 %v569_v19  ;;  %v555_v29 = vadd.f32 1.0, %v1396_v20 }
  0xfe   : > { %v1398_v26 = vpop.eup %1397  ;;  %v486_v28 = vpop.f32.mrf.mxu0  ;;  %1293 = vmatmul.mubr.f32.vlgmr.msra.gmra.mxu0 %v570_v21  ;;  %v572_v39 = vmul.f32 %v556_v25, %v508_v30  ;;  %v515_v12 = vmul.f32 0.5, %v1768_v18 }
  0xff   : > { %1411 = verf.f32 %v531_v23  ;;  %v534_v31 = vmul.f32 0.70710677, %v1772_v24  ;;  %v1778_v32 = vadd.f32 %v1719_v40, %v486_v28  ;;  %v571_v35 = vmul.f32 %v555_v29, %v507_v27 }
 0x100   : > { %v1400_v33 = vpop.eup %1399  ;;  %v1259_v34 = vpop.f32.mrf.mxu0  ;;  %v558_v36 = vadd.f32 1.0, %v1398_v26  ;;  %v518_v20 = vmul.f32 0.5, %v1772_v24 }
 0x101   : > { %1413 = verf.f32 %v534_v31  ;;  %v533_v37 = vmul.f32 0.70710677, %v1778_v32  ;;  %v1782_v38 = vadd.f32 %v1259_v34, %v1719_v40  ;;  %1295 = vmatprep.mubr.f32.mxu0 %v571_v35  ;;  %v557_v47 = vadd.f32 1.0, %v1400_v33 }
 0x102   : > { %v1402_v41 = vpop.eup %1401  ;;  %v496_v44 = vpop.f32.mrf.mxu0  ;;  %1296 = vmatmul.mubr.f32.gmra.mxu0 %v572_v39  ;;  %v574_v56 = vmul.f32 %v558_v36, %v510_v43  ;;  %v517_v21 = vmul.f32 0.5, %v1778_v32 }
 0x103   : > { %1415 = verf.f32 %v533_v37  ;;  %v536_v49 = vmul.f32 0.70710677, %v1782_v38  ;;  %v1788_v50 = vadd.f32 %v1719_v40, %v496_v44  ;;  %v573_v55 = vmul.f32 %v557_v47, %v509_v46 }
 0x104   : > { %v1404_v52 = vpop.eup %1403  ;;  %v560_v61 = vadd.f32 1.0, %v1402_v41  ;;  %v520_v29 = vmul.f32 0.5, %v1782_v38  ;;  %v1804_v41 = vld [vmem:[%s2122_s4] ss:$0 sm:$0xff] }
 0x105   : > { %1417 = verf.f32 %v536_v49  ;;  %v535_v58 = vmul.f32 0.70710677, %v1788_v50  ;;  %v559_v59 = vadd.f32 1.0, %v1404_v52  ;;  %1298 = vmatprep.mubr.f32.mxu1 %v573_v55  ;;  %v519_v30 = vmul.f32 0.5, %v1788_v50 }
 0x106   : > { %v1406_v62 = vpop.eup %1405  ;;  %1299 = vmatmul.mubr.f32.vlgmr.msra.gmra.mxu1 %v574_v56  ;;  %v576_v4 = vmul.f32 %v560_v61, %v512_v0 }
 0x107   : > { %1419 = verf.f32 %v535_v58  ;;  %v575_v1 = vmul.f32 %v559_v59, %v511_v53  ;;  %v562_v5 = vadd.f32 1.0, %v1406_v62 }
 0x108   : > { %v1408_v40 = vpop.eup %1407 }
 0x109   : > { %1301 = vmatprep.mubr.f32.mxu1 %v575_v1  ;;  %v561_v9 = vadd.f32 1.0, %v1408_v40  ;;  %v578_v16 = vmul.f32 %v562_v5, %v514_v3 }
 0x10a   : > { %v1410_v6 = vpop.eup %1409  ;;  %1302 = vmatmul.mubr.f32.gmra.mxu1 %v576_v4 }
 0x10b   : > { %v564_v13 = vadd.f32 1.0, %v1410_v6  ;;  %v577_v15 = vmul.f32 %v561_v9, %v513_v7 }
 0x10c   : > { %v1412_v14 = vpop.eup %1411 }
 0x10d   : > { %v563_v17 = vadd.f32 1.0, %v1412_v14  ;;  %1304 = vmatprep.mubr.f32.mxu1 %v577_v15  ;;  %v580_v23 = vmul.f32 %v564_v13, %v516_v10 }
 0x10e   : > { %v1414_v19 = vpop.eup %1413  ;;  %1305 = vmatmul.mubr.f32.gmra.mxu1 %v578_v16 }
 0x10f   : > { %v579_v22 = vmul.f32 %v563_v17, %v515_v12  ;;  %v566_v25 = vadd.f32 1.0, %v1414_v19 }
 0x110   : > { %v1416_v26 = vpop.eup %1415 }
 0x111   : > { %1307 = vmatprep.mubr.f32.mxu1 %v579_v22  ;;  %v565_v27 = vadd.f32 1.0, %v1416_v26  ;;  %v582_v33 = vmul.f32 %v566_v25, %v518_v20 }
 0x112   : > { %v1418_v28 = vpop.eup %1417  ;;  %1308 = vmatmul.mubr.f32.gmra.mxu1 %v580_v23 }
 0x113   : > { %v581_v31 = vmul.f32 %v565_v27, %v517_v21  ;;  %v568_v34 = vadd.f32 1.0, %v1418_v28 }
 0x114   : > { %v1420_v35 = vpop.eup %1419 }
 0x115   : > { %1310 = vmatprep.mubr.f32.mxu1 %v581_v31  ;;  %v567_v36 = vadd.f32 1.0, %v1420_v35  ;;  %v584_v39 = vmul.f32 %v568_v34, %v520_v29 }
 0x116   : > { %1311 = vmatmul.mubr.f32.gmra.mxu1 %v582_v33 }
 0x117   : > { %v583_v37 = vmul.f32 %v567_v36, %v519_v30 }
 0x119   : > { %1313 = vmatprep.mubr.f32.mxu1 %v583_v37 }
 0x11a   : > { %1314 = vmatmul.mubr.f32.gmra.mxu1 %v584_v39 }
 0x1be   : > { %v1294_v43 = vpop.f32.mrf.mxu0 }
 0x1bf   : > { %v680_v44 = vadd.f32 %v1294_v43, %v1804_v41 }
 0x1c0   : > { %v674_v46 = vpop.f32.mrf.mxu0 }
 0x1c1   : > { %v1808_v47 = vadd.f32 %v680_v44, %v1722_v42  ;;  %v675_v49 = vadd.f32 %v1804_v41, %v674_v46 }
 0x1c2   : > { %v1297_v52 = vpop.f32.mrf.mxu0 }
 0x1c3   : > { %771 = vadd.xlane.f32.xlu0 %v1808_v47  ;;  %v802_v53 = vmul.f32 %v1808_v47, %v1808_v47  ;;  %v690_v55 = vadd.f32 %v1297_v52, %v1804_v41  ;;  %v1816_v56 = vadd.f32 %v675_v49, %v1726_v45 }
 0x1c4   : > { %v684_v58 = vpop.f32.mrf.mxu0 }
 0x1c5   : > { %819 = vadd.xlane.f32.xlu1 %v802_v53  ;;  %v685_v59 = vadd.f32 %v1804_v41, %v684_v58  ;;  %v1820_v42 = vadd.f32 %v690_v55, %v1730_v48  ;;  %v801_v0 = vmul.f32 %v1816_v56, %v1816_v56 }
 0x1c6   : > { %v1300_v61 = vpop.f32.mrf.mxu1 }
 0x1c7   : > { %769 = vadd.xlane.f32.xlu0 %v1816_v56  ;;  %v1824_v62 = vadd.f32 %v685_v59, %v1734_v51  ;;  %v700_v3 = vadd.f32 %v1300_v61, %v1804_v41  ;;  %v804_v51 = vmul.f32 %v1820_v42, %v1820_v42 }
 0x1c8   : > { %v694_v45 = vpop.f32.mrf.mxu1 }
 0x1c9   : > { %775 = vadd.xlane.f32.xlu1 %v1820_v42  ;;  %v695_v1 = vadd.f32 %v1804_v41, %v694_v45  ;;  %v803_v48 = vmul.f32 %v1824_v62, %v1824_v62  ;;  %v1840_v6 = vadd.f32 %v700_v3, %v1738_v54 }
 0x1ca   : > { %v1303_v40 = vpop.f32.mrf.mxu1 }
 0x1cb   : > { %817 = vadd.xlane.f32.xlu0 %v801_v0  ;;  %v1837_v4 = vadd.f32 %v695_v1, %v1742_v57  ;;  %v710_v12 = vadd.f32 %v1303_v40, %v1804_v41  ;;  %v806_v57 = vmul.f32 %v1840_v6, %v1840_v6 }
 0x1cc   : > { %v704_v5 = vpop.f32.mrf.mxu1 }
 0x1cd   : > { %773 = vadd.xlane.f32.xlu1 %v1824_v62  ;;  %v705_v7 = vadd.f32 %v1804_v41, %v704_v5  ;;  %v805_v9 = vmul.f32 %v1837_v4, %v1837_v4  ;;  %v1854_v14 = vadd.f32 %v710_v12, %v1746_v60 }
 0x1ce   : > { %v1306_v10 = vpop.f32.mrf.mxu1 }
 0x1cf   : > { %821 = vadd.xlane.f32.xlu0 %v803_v48  ;;  %v1851_v13 = vadd.f32 %v705_v7, %v1750_v63  ;;  %v720_v19 = vadd.f32 %v1306_v10, %v1804_v41  ;;  %v808_v63 = vmul.f32 %v1854_v14, %v1854_v14 }
 0x1d0   : > { %v714_v54 = vpop.f32.mrf.mxu1 }
 0x1d1   : > { %823 = vadd.xlane.f32.xlu1 %v804_v51  ;;  %v715_v15 = vadd.f32 %v1804_v41, %v714_v54  ;;  %v807_v16 = vmul.f32 %v1851_v13, %v1851_v13  ;;  %v1868_v21 = vadd.f32 %v720_v19, %v1754_v2 }
 0x1d2   : > { %v1309_v17 = vpop.f32.mrf.mxu1 }
 0x1d3   : > { %777 = vadd.xlane.f32.xlu0 %v1837_v4  ;;  %v1865_v20 = vadd.f32 %v715_v15, %v1758_v8  ;;  %v730_v26 = vadd.f32 %v1309_v17, %v1804_v41  ;;  %v810_v8 = vmul.f32 %v1868_v21, %v1868_v21 }
 0x1d4   : > { %v724_v60 = vpop.f32.mrf.mxu1 }
 0x1d5   : > { %779 = vadd.xlane.f32.xlu1 %v1840_v6  ;;  %v725_v22 = vadd.f32 %v1804_v41, %v724_v60  ;;  %v809_v23 = vmul.f32 %v1865_v20, %v1865_v20  ;;  %v1882_v28 = vadd.f32 %v730_v26, %v1762_v11 }
 0x1d6   : > { %v1312_v25 = vpop.f32.mrf.mxu1 }
 0x1d7   : > { %825 = vadd.xlane.f32.xlu0 %v805_v9  ;;  %v1879_v27 = vadd.f32 %v725_v22, %v1768_v18  ;;  %v740_v33 = vadd.f32 %v1312_v25, %v1804_v41  ;;  %v812_v18 = vmul.f32 %v1882_v28, %v1882_v28 }
 0x1d8   : > { %v734_v2 = vpop.f32.mrf.mxu1 }
 0x1d9   : > { %827 = vadd.xlane.f32.xlu1 %v806_v57  ;;  %v735_v29 = vadd.f32 %v1804_v41, %v734_v2  ;;  %v811_v30 = vmul.f32 %v1879_v27, %v1879_v27  ;;  %v1896_v35 = vadd.f32 %v740_v33, %v1772_v24 }
 0x1da   : > { %v1315_v31 = vpop.f32.mrf.mxu1 }
 0x1db   : > { %781 = vadd.xlane.f32.xlu0 %v1851_v13  ;;  %v1893_v34 = vadd.f32 %v735_v29, %v1778_v32  ;;  %v750_v39 = vadd.f32 %v1315_v31, %v1804_v41  ;;  %v814_v32 = vmul.f32 %v1896_v35, %v1896_v35 }
 0x1dc   : > { %v744_v11 = vpop.f32.mrf.mxu1 }
 0x1dd   : > { %783 = vadd.xlane.f32.xlu1 %v1854_v14  ;;  %v745_v36 = vadd.f32 %v1804_v41, %v744_v11  ;;  %v813_v37 = vmul.f32 %v1893_v34, %v1893_v34  ;;  %v1910_v24 = vadd.f32 %v750_v39, %v1782_v38 }
 0x1df   : > { %829 = vadd.xlane.f32.xlu0 %v807_v16  ;;  %v1907_v43 = vadd.f32 %v745_v36, %v1788_v50  ;;  %v816_v41 = vmul.f32 %v1910_v24, %v1910_v24 }
 0x1e1   : > { %831 = vadd.xlane.f32.xlu1 %v808_v63  ;;  %v815_v44 = vmul.f32 %v1907_v43, %v1907_v43 }
 0x1e3   : > { %785 = vadd.xlane.f32.xlu0 %v1865_v20 }
 0x1e5   : > { %787 = vadd.xlane.f32.xlu1 %v1868_v21 }
 0x1e7   : > { %833 = vadd.xlane.f32.xlu0 %v809_v23 }
 0x1e9   : > { %835 = vadd.xlane.f32.xlu1 %v810_v8 }
 0x1eb   : > { %789 = vadd.xlane.f32.xlu0 %v1879_v27 }
 0x1ed   : > { %791 = vadd.xlane.f32.xlu1 %v1882_v28 }
 0x1ef   : > { %837 = vadd.xlane.f32.xlu0 %v811_v30 }
 0x1f1   : > { %839 = vadd.xlane.f32.xlu1 %v812_v18 }
 0x1f3   : > { %793 = vadd.xlane.f32.xlu0 %v1893_v34 }
 0x1f5   : > { %795 = vadd.xlane.f32.xlu1 %v1896_v35 }
 0x1f7   : > { %841 = vadd.xlane.f32.xlu0 %v813_v37 }
 0x1f9   : > { %843 = vadd.xlane.f32.xlu1 %v814_v32  ;;  %v1943_v32 = vld [vmem:[%s2123_s5] ss:$0 sm:$0xff] }
 0x1fb   : > { %797 = vadd.xlane.f32.xlu0 %v1907_v43 }
 0x1fd   : > { %799 = vadd.xlane.f32.xlu1 %v1910_v24 }
 0x1ff   : > { %845 = vadd.xlane.f32.xlu0 %v815_v44 }
 0x201   : > { %847 = vadd.xlane.f32.xlu1 %v816_v41 }
 0x24c   : > { %v772_v46 = vpop.xlane.xlu0 %771 }
 0x24d   : > { %v850_v49 = vmul.f32 0.0078125, %v772_v46 }
 0x24e   : > { %v820_v50 = vpop.xlane.xlu1 %819 }
 0x24f   : > { %v882_v52 = vmul.f32 %v850_v49, %v850_v49  ;;  %v866_v53 = vmul.f32 0.0078125, %v820_v50  ;;  %v930_v33 = vsub.f32 %v1808_v47, %v850_v49  ;;  %v1952_v50 = vld [vmem:[%s2124_s6] ss:$0 sm:$0xff] }
 0x250   : > { %v770_v55 = vpop.xlane.xlu0 %769 }
 0x251   : > { %v898_v38 = vsub.f32 %v866_v53, %v882_v52  ;;  %v1918_v58 = vmul.f32 0.0078125, %v770_v55 }
 0x252   : > { %v776_v59 = vpop.xlane.xlu1 %775 }
 0x253   : > { %v914_v61 = vmax.f32 %v898_v38, 0.0  ;;  %v881_v1 = vmul.f32 %v1918_v58, %v1918_v58  ;;  %v1922_v3 = vmul.f32 0.0078125, %v776_v59  ;;  %v929_v59 = vsub.f32 %v1816_v56, %v1918_v58 }
 0x254   : > { %v818_v0 = vpop.xlane.xlu0 %817 }
 0x255   : > { %v946_v45 = vadd.f32 1e-05, %v914_v61  ;;  %v865_v48 = vmul.f32 0.0078125, %v818_v0  ;;  %v884_v54 = vmul.f32 %v1922_v3, %v1922_v3 }
 0x256   : > { %v774_v40 = vpop.xlane.xlu1 %773 }
 0x257   : > { %1421 = vrsqrt.f32 %v946_v45  ;;  %v897_v51 = vsub.f32 %v865_v48, %v881_v1  ;;  %v1924_v5 = vmul.f32 0.0078125, %v774_v40 }
 0x258   : > { %v822_v7 = vpop.xlane.xlu0 %821 }
 0x259   : > { %v913_v9 = vmax.f32 %v897_v51, 0.0  ;;  %v883_v10 = vmul.f32 %v1924_v5, %v1924_v5  ;;  %v867_v12 = vmul.f32 0.0078125, %v822_v7 }
 0x25a   : > { %v824_v57 = vpop.xlane.xlu1 %823 }
 0x25b   : > { %v945_v15 = vadd.f32 1e-05, %v913_v9  ;;  %v899_v16 = vsub.f32 %v867_v12, %v883_v10  ;;  %v868_v17 = vmul.f32 0.0078125, %v824_v57 }
 0x25c   : > { %v778_v19 = vpop.xlane.xlu0 %777 }
 0x25d   : > { %1423 = vrsqrt.f32 %v945_v15  ;;  %v915_v63 = vmax.f32 %v899_v16, 0.0  ;;  %v900_v60 = vsub.f32 %v868_v17, %v884_v54  ;;  %v1930_v22 = vmul.f32 0.0078125, %v778_v19 }
 0x25e   : > { %v780_v23 = vpop.xlane.xlu1 %779  ;;  %v931_v54 = vsub.f32 %v1824_v62, %v1924_v5  ;;  %v932_v19 = vsub.f32 %v1820_v42, %v1922_v3 }
 0x25f   : > { %v947_v25 = vadd.f32 1e-05, %v915_v63  ;;  %v916_v26 = vmax.f32 %v900_v60, 0.0  ;;  %v1932_v8 = vmul.f32 0.0078125, %v780_v23  ;;  %v885_v30 = vmul.f32 %v1930_v22, %v1930_v22 }
 0x260   : > { %v826_v2 = vpop.xlane.xlu0 %825 }
 0x261   : > { %1425 = vrsqrt.f32 %v947_v25  ;;  %v948_v29 = vadd.f32 1e-05, %v916_v26  ;;  %v869_v31 = vmul.f32 0.0078125, %v826_v2  ;;  %v886_v11 = vmul.f32 %v1932_v8, %v1932_v8 }
 0x262   : > { %v828_v18 = vpop.xlane.xlu1 %827 }
 0x263   : > { %1427 = vrsqrt.f32 %v948_v29  ;;  %v901_v36 = vsub.f32 %v869_v31, %v885_v30  ;;  %v870_v37 = vmul.f32 0.0078125, %v828_v18 }
 0x264   : > { %v1422_v39 = vpop.eup %1421  ;;  %v782_v44 = vpop.xlane.xlu0 %781 }
 0x265   : > { %v978_v41 = vmul.f32 %v1422_v39, %v930_v33  ;;  %v917_v46 = vmax.f32 %v901_v36, 0.0  ;;  %v902_v47 = vsub.f32 %v870_v37, %v886_v11  ;;  %v1947_v49 = vmul.f32 0.0078125, %v782_v44 }
 0x266   : > { %v784_v52 = vpop.xlane.xlu1 %783 }
 0x267   : > { %v1001_v53 = vmul.f32 %v1943_v32, %v978_v41  ;;  %v949_v55 = vadd.f32 1e-05, %v917_v46  ;;  %v918_v38 = vmax.f32 %v902_v47, 0.0  ;;  %v887_v61 = vmul.f32 %v1947_v49, %v1947_v49 }
 0x268   : > { %v1959_v0 = vmul.f32 0.0078125, %v784_v52  ;;  %v830_v45 = vpop.xlane.xlu0 %829  ;;  %v933_v47 = vsub.f32 %v1837_v4, %v1930_v22 }
 0x269   : > { %v1024_v1 = vadd.f32 %v1952_v50, %v1001_v53  ;;  %1429 = vrsqrt.f32 %v949_v55  ;;  %v950_v48 = vadd.f32 1e-05, %v918_v38  ;;  %v871_v40 = vmul.f32 0.0078125, %v830_v45 }
 0x26a   : > { %v1424_v51 = vpop.eup %1423  ;;  %v888_v7 = vmul.f32 %v1959_v0, %v1959_v0  ;;  %v832_v9 = vpop.xlane.xlu1 %831 }
 0x26b   : > { %1040 = vst [vmem:[%s1964_s18 + $0x8] sm:$0xff] %v1024_v1  ;;  %v977_v56 = vmul.f32 %v1424_v51, %v929_v59  ;;  %1431 = vrsqrt.f32 %v950_v48  ;;  %v903_v58 = vsub.f32 %v871_v40, %v887_v61  ;;  %v872_v10 = vmul.f32 0.0078125, %v832_v9 }
 0x26c   : > { %v786_v12 = vpop.xlane.xlu0 %785  ;;  %v934_v61 = vsub.f32 %v1840_v6, %v1932_v8 }
 0x26d   : > { %v1000_v57 = vmul.f32 %v1943_v32, %v977_v56  ;;  %v919_v15 = vmax.f32 %v903_v58, 0.0  ;;  %v904_v16 = vsub.f32 %v872_v10, %v888_v7  ;;  %v1972_v63 = vmul.f32 0.0078125, %v786_v12 }
 0x26e   : > { %v1426_v17 = vpop.eup %1425  ;;  %v788_v60 = vpop.xlane.xlu1 %787 }
 0x26f   : > { %v1023_v23 = vadd.f32 %v1952_v50, %v1000_v57  ;;  %v979_v25 = vmul.f32 %v1426_v17, %v931_v54  ;;  %v951_v26 = vadd.f32 1e-05, %v919_v15  ;;  %v920_v2 = vmax.f32 %v904_v16, 0.0 }
 0x270   : > { %v1428_v29 = vpop.eup %1427  ;;  %v1975_v30 = vmul.f32 0.0078125, %v788_v60  ;;  %v834_v31 = vpop.xlane.xlu0 %833  ;;  %v889_v42 = vmul.f32 %v1972_v63, %v1972_v63  ;;  %v935_v17 = vsub.f32 %v1851_v13, %v1947_v49 }
 0x271   : > { %1039 = vst [vmem:[%s1964_s18] sm:$0xff] %v1023_v23  ;;  %v1002_v62 = vmul.f32 %v1943_v32, %v979_v25  ;;  %v980_v5 = vmul.f32 %v1428_v29, %v932_v19  ;;  %1433 = vrsqrt.f32 %v951_v26  ;;  %v952_v33 = vadd.f32 1e-05, %v920_v2 }
 0x272   : > { %v890_v3 = vmul.f32 %v1975_v30, %v1975_v30  ;;  %v873_v18 = vmul.f32 0.0078125, %v834_v31  ;;  %v836_v11 = vpop.xlane.xlu1 %835  ;;  %v936_v2 = vsub.f32 %v1854_v14, %v1959_v0 }
 0x273   : > { %v1025_v36 = vadd.f32 %v1952_v50, %v1002_v62  ;;  %v1003_v37 = vmul.f32 %v1943_v32, %v980_v5  ;;  %1435 = vrsqrt.f32 %v952_v33  ;;  %v874_v39 = vmul.f32 0.0078125, %v836_v11 }
 0x274   : > { %v905_v44 = vsub.f32 %v873_v18, %v889_v42  ;;  %v790_v41 = vpop.xlane.xlu0 %789 }
 0x275   : > { %1041 = vst [vmem:[%s1964_s18 + $0x10] sm:$0xff] %v1025_v36  ;;  %v1026_v46 = vadd.f32 %v1952_v50, %v1003_v37  ;;  %v906_v52 = vsub.f32 %v874_v39, %v890_v3  ;;  %v1989_v53 = vmul.f32 0.0078125, %v790_v41 }
 0x276   : > { %v1430_v55 = vpop.eup %1429  ;;  %v921_v38 = vmax.f32 %v905_v44, 0.0  ;;  %v792_v59 = vpop.xlane.xlu1 %791 }
 0x277   : > { %1042 = vst [vmem:[%s1964_s18 + $0x18] sm:$0xff] %v1026_v46  ;;  %v981_v45 = vmul.f32 %v1430_v55, %v933_v47  ;;  %v922_v1 = vmax.f32 %v906_v52, 0.0  ;;  %v891_v51 = vmul.f32 %v1989_v53, %v1989_v53  ;;  %v1996_v7 = vmul.f32 0.0078125, %v792_v59 }
 0x278   : > { %v1432_v48 = vpop.eup %1431  ;;  %v953_v40 = vadd.f32 1e-05, %v921_v38  ;;  %v838_v4 = vpop.xlane.xlu0 %837  ;;  %v937_v38 = vsub.f32 %v1865_v20, %v1972_v63 }
 0x279   : > { %v1004_v22 = vmul.f32 %v1943_v32, %v981_v45  ;;  %v982_v9 = vmul.f32 %v1432_v48, %v934_v61  ;;  %v954_v56 = vadd.f32 1e-05, %v922_v1  ;;  %v875_v58 = vmul.f32 0.0078125, %v838_v4 }
 0x27a   : > { %1437 = vrsqrt.f32 %v953_v40  ;;  %v840_v10 = vpop.xlane.xlu1 %839  ;;  %v892_v57 = vmul.f32 %v1996_v7, %v1996_v7  ;;  %v938_v45 = vsub.f32 %v1868_v21, %v1975_v30 }
 0x27b   : > { %v1027_v6 = vadd.f32 %v1952_v50, %v1004_v22  ;;  %v1005_v8 = vmul.f32 %v1943_v32, %v982_v9  ;;  %1439 = vrsqrt.f32 %v954_v56  ;;  %v907_v12 = vsub.f32 %v875_v58, %v891_v51 }
 0x27c   : > { %v876_v54 = vmul.f32 0.0078125, %v840_v10  ;;  %v794_v15 = vpop.xlane.xlu0 %793 }
 0x27d   : > { %1043 = vst [vmem:[%s1964_s18 + $0x20] sm:$0xff] %v1027_v6  ;;  %v1028_v16 = vadd.f32 %v1952_v50, %v1005_v8  ;;  %v923_v19 = vmax.f32 %v907_v12, 0.0  ;;  %v2007_v60 = vmul.f32 0.0078125, %v794_v15 }
 0x27e   : > { %v1434_v23 = vpop.eup %1433  ;;  %v908_v25 = vsub.f32 %v876_v54, %v892_v57  ;;  %v796_v26 = vpop.xlane.xlu1 %795  ;;  %v939_v54 = vsub.f32 %v1879_v27, %v1989_v53 }
 0x27f   : > { %1044 = vst [vmem:[%s1964_s18 + $0x28] sm:$0xff] %v1028_v16  ;;  %v983_v29 = vmul.f32 %v1434_v23, %v935_v17  ;;  %v955_v31 = vadd.f32 1e-05, %v923_v19  ;;  %v893_v33 = vmul.f32 %v2007_v60, %v2007_v60  ;;  %v2014_v42 = vmul.f32 0.0078125, %v796_v26 }
 0x280   : > { %v1436_v62 = vpop.eup %1435  ;;  %v924_v5 = vmax.f32 %v908_v25, 0.0  ;;  %v842_v13 = vpop.xlane.xlu0 %841  ;;  %v940_v26 = vsub.f32 %v1882_v28, %v1996_v7 }
 0x281   : > { %v1006_v49 = vmul.f32 %v1943_v32, %v983_v29  ;;  %v984_v3 = vmul.f32 %v1436_v62, %v936_v2  ;;  %1441 = vrsqrt.f32 %v955_v31  ;;  %v877_v18 = vmul.f32 0.0078125, %v842_v13 }
 0x282   : > { %v956_v11 = vadd.f32 1e-05, %v924_v5  ;;  %v894_v14 = vmul.f32 %v2014_v42, %v2014_v42  ;;  %v844_v0 = vpop.xlane.xlu1 %843  ;;  %v941_v5 = vsub.f32 %v1893_v34, %v2007_v60  ;;  %v942_v7 = vsub.f32 %v1896_v35, %v2014_v42 }
 0x283   : > { %v1029_v36 = vadd.f32 %v1952_v50, %v1006_v49  ;;  %v1007_v37 = vmul.f32 %v1943_v32, %v984_v3  ;;  %v909_v39 = vsub.f32 %v877_v18, %v893_v33  ;;  %v878_v44 = vmul.f32 0.0078125, %v844_v0 }
 0x284   : > { %1443 = vrsqrt.f32 %v956_v11  ;;  %v798_v41 = vpop.xlane.xlu0 %797 }
 0x285   : > { %1045 = vst [vmem:[%s1964_s18 + $0x30] sm:$0xff] %v1029_v36  ;;  %v1030_v46 = vadd.f32 %v1952_v50, %v1007_v37  ;;  %v925_v47 = vmax.f32 %v909_v39, 0.0  ;;  %v910_v52 = vsub.f32 %v878_v44, %v894_v14  ;;  %v2023_v55 = vmul.f32 0.0078125, %v798_v41 }
 0x286   : > { %v800_v59 = vpop.xlane.xlu1 %799 }
 0x287   : > { %v1438_v61 = vpop.eup %1437  ;;  %1046 = vst [vmem:[%s1964_s18 + $0x38] sm:$0xff] %v1030_v46  ;;  %v957_v1 = vadd.f32 1e-05, %v925_v47  ;;  %v926_v48 = vmax.f32 %v910_v52, 0.0  ;;  %v895_v4 = vmul.f32 %v2023_v55, %v2023_v55  ;;  %v864_v22 = vmul.f32 0.0078125, %v800_v59 }
 0x288   : > { %v1440_v40 = vpop.eup %1439  ;;  %v985_v51 = vmul.f32 %v1438_v61, %v937_v38  ;;  %v846_v9 = vpop.xlane.xlu0 %845  ;;  %v943_v60 = vsub.f32 %v1907_v43, %v2023_v55 }
 0x289   : > { %v986_v56 = vmul.f32 %v1440_v40, %v938_v45  ;;  %1445 = vrsqrt.f32 %v957_v1  ;;  %v958_v58 = vadd.f32 1e-05, %v926_v48  ;;  %v879_v20 = vmul.f32 0.0078125, %v846_v9 }
 0x28a   : > { %v1008_v63 = vmul.f32 %v1943_v32, %v985_v51  ;;  %v896_v10 = vmul.f32 %v864_v22, %v864_v22  ;;  %v848_v6 = vpop.xlane.xlu1 %847  ;;  %v944_v42 = vsub.f32 %v1910_v24, %v864_v22 }
 0x28b   : > { %v1009_v21 = vmul.f32 %v1943_v32, %v986_v56  ;;  %1447 = vrsqrt.f32 %v958_v58  ;;  %v911_v30 = vsub.f32 %v879_v20, %v895_v4  ;;  %v880_v8 = vmul.f32 0.0078125, %v848_v6 }
 0x28c   : > { %v1031_v12 = vadd.f32 %v1952_v50, %v1008_v63 }
 0x28d   : > { %v1032_v57 = vadd.f32 %v1952_v50, %v1009_v21  ;;  %v927_v15 = vmax.f32 %v911_v30, 0.0  ;;  %v912_v16 = vsub.f32 %v880_v8, %v896_v10 }
 0x28e   : > { %v1442_v17 = vpop.eup %1441  ;;  %1047 = vst [vmem:[%s1964_s18 + $0x40] sm:$0xff] %v1031_v12 }
 0x28f   : > { %1048 = vst [vmem:[%s1964_s18 + $0x48] sm:$0xff] %v1032_v57  ;;  %v987_v19 = vmul.f32 %v1442_v17, %v939_v54  ;;  %v959_v23 = vadd.f32 1e-05, %v927_v15  ;;  %v928_v25 = vmax.f32 %v912_v16, 0.0 }
 0x291   : > { %v1444_v2 = vpop.eup %1443  ;;  %v1010_v29 = vmul.f32 %v1943_v32, %v987_v19  ;;  %1449 = vrsqrt.f32 %v959_v23  ;;  %v960_v31 = vadd.f32 1e-05, %v928_v25 }
 0x292   : > { %v988_v62 = vmul.f32 %v1444_v2, %v940_v26 }
 0x293   : > { %v1033_v27 = vadd.f32 %v1952_v50, %v1010_v29  ;;  %1451 = vrsqrt.f32 %v960_v31 }
 0x294   : > { %v1011_v53 = vmul.f32 %v1943_v32, %v988_v62 }
 0x295   : > { %1049 = vst [vmem:[%s1964_s18 + $0x50] sm:$0xff] %v1033_v27 }
 0x296   : > { %v1446_v33 = vpop.eup %1445  ;;  %v1034_v28 = vadd.f32 %v1952_v50, %v1011_v53 }
 0x297   : > { %v989_v13 = vmul.f32 %v1446_v33, %v941_v5 }
 0x298   : > { %v1448_v49 = vpop.eup %1447  ;;  %1050 = vst [vmem:[%s1964_s18 + $0x58] sm:$0xff] %v1034_v28 }
 0x299   : > { %v1012_v3 = vmul.f32 %v1943_v32, %v989_v13  ;;  %v990_v18 = vmul.f32 %v1448_v49, %v942_v7 }
 0x29b   : > { %v1035_v11 = vadd.f32 %v1952_v50, %v1012_v3  ;;  %v1013_v14 = vmul.f32 %v1943_v32, %v990_v18 }
 0x29d   : > { %1051 = vst [vmem:[%s1964_s18 + $0x60] sm:$0xff] %v1035_v11  ;;  %v1036_v34 = vadd.f32 %v1952_v50, %v1013_v14 }
 0x29e   : > { %v1450_v35 = vpop.eup %1449 }
 0x29f   : > { %1052 = vst [vmem:[%s1964_s18 + $0x68] sm:$0xff] %v1036_v34  ;;  %v991_v0 = vmul.f32 %v1450_v35, %v943_v60 }
 0x2a0   : > { %v1452_v36 = vpop.eup %1451 }
 0x2a1   : > { %v1014_v37 = vmul.f32 %v1943_v32, %v991_v0  ;;  %v992_v39 = vmul.f32 %v1452_v36, %v944_v42 }
 0x2a3   : > { %v1037_v44 = vadd.f32 %v1952_v50, %v1014_v37  ;;  %v1015_v41 = vmul.f32 %v1943_v32, %v992_v39 }
 0x2a5   : > { %1053 = vst [vmem:[%s1964_s18 + $0x70] sm:$0xff] %v1037_v44  ;;  %v1038_v43 = vadd.f32 %v1952_v50, %v1015_v41 }
 0x2a7   : > { %1054 = vst [vmem:[%s1964_s18 + $0x78] sm:$0xff] %v1038_v43 }
 0x2a8   : > { %1466 = shalt.err (!%p1463_p3)
}
 0x2a9   : > { %s1467_s14 = scalar_lea.hbm %s2069_s8, 2048  ;;  %s1471_s17 = scalar_lea.hbm %s2125_s7, 4096 }
 0x2aa   : > { %p1468_p4 = scmp.ne.s32.totalorder %s2069_s8, %s1467_s14  ;;  %p1472_p9 = scmp.lt.s32.totalorder %s2069_s8, %s2125_s7 }
 0x2ab   : > { %p1473_p10 = scmp.lt.s32.totalorder %s1471_s17, %s1467_s14 }
 0x2ac   : > { %p1469_p7 = pnand %p1468_p4, %p1596_p5 }
 0x2ad   : > { %p1474_p11 = por %p1473_p10, %p1472_p9 }
 0x2ae   : > { %p1470_p8 = pneg %p1469_p7 }
 0x2b0   : > { %p1475_p12 = pnand %p1474_p11, %p1470_p8 }
 0x2b2   : > { %1478 = shalt.err (!%p1475_p12)
}
 0x2b3   : > { %s1516_s23 = smov 128   ;;  %s1517_s29 = smov 8  }
 0x2b4   : > { %1348 = dma.vmem_to_hbm [thread:$0]  (%p1596_p5), %s2071_s22, 2048, %s2069_s8, %s2078_s28, %s1516_s23, %s1516_s23, %s1517_s29  }
 0x2b5 PF: > { %p1354_p13 = scmp.ge.s32.totalorder %s1513_s27, 2  ;;  %s1084_s9 = sand.u32 1, %s1501_s24  }
 0x2b6   : > { %s1085_s13 = scalar_lea.sflag [#allocation3], %s1084_s9 }
 0x2b7   : > { %p1351_p0 = pnand %p1354_p13, %p1600_p6 }
 0x2b9   : > { %p1352_p1 = pneg %p1351_p0 }
 0x2bb   : > { %1496 = dma.done.wait (%p1352_p1), %s1085_s13, 2048  }
 0x2bc   : > { %1498 = vsyncadd (%p1352_p1), %s1085_s13, 4294965248  ;;  %p17_p2 = scmp.ge.s32.totalorder %s1583_s30, 4   ;;  %s2128_s24 = smov %s1505_s25 }
 0x2bd   : > { %s2129_s25 = smov %s1509_s26  ;;  %s2130_s26 = smov %s1594_s10 }
 0x2be   : > { %s2131_s27 = smov %s1583_s30  ;;  %19 = sbr.rel (!%p17_p2) target bundleno = 3 (0x3), region = 83 }
 0x2c3   :  { %1090 = vsyncpa [#allocation3], 1 }
 0x2c4   :  { %1092 = vsyncpa [#allocation3 + $0x1], 1 }

// kernel: tpu_custom_call.1
= control target key start
LH: loop header
LB: loop body
LE: loop exit
PB: predicated region body
PF: predicated region fallthrough
CT: control target
= control target key end

     0   :  { %12 = vsyncpa [#allocation3], 0  ;;  %s2118_s0 = inlined_call_operand.vmem [shape: f32[256,64], index: 0, kind: input, shape index: {}]   ;;  %s2119_s1 = inlined_call_operand.vmem [shape: f32[64,128], index: 1, kind: input, shape index: {}]   ;;  %s2120_s2 = inlined_call_operand.vmem [shape: f32[1,128], index: 2, kind: input, shape index: {}]   ;;  %s2121_s3 = inlined_call_operand.vmem [shape: f32[128,128], index: 3, kind: input, shape index: {}]   ;;  %s2122_s4 = inlined_call_operand.vmem [shape: f32[1,128], index: 4, kind: input, shape index: {}]   ;;  %s2123_s5 = inlined_call_operand.vmem [shape: f32[1,128], index: 5, kind: input, shape index: {}]   ;;  %s2124_s6 = inlined_call_operand.vmem [shape: f32[1,128], index: 6, kind: input, shape index: {}]   ;;  %s2125_s7 = inlined_call_operand.hbm [shape: f32[256,128], index: 7, kind: output, shape index: {}]  }
   0x1   :  { %14 = vsyncpa [#allocation3 + $0x1], 0  ;;  %s1558_s24 = smov 0   ;;  %s1560_s25 = smov 0  }
   0x2   :  { %s1562_s26 = smov 0   ;;  %s1564_s27 = smov 0  }
   0x3 LB: > { %s1579_s28 = sadd.s32 4294967295, %s1513_s27   ;;  %s1131_s29 = sadd.s32 4294967294, %s1513_s27   ;;  %s1513_s27 = sphi %s1564_s27, %s2131_s27   ;;  %s1509_s26 = sphi %s1562_s26, %s2130_s26   ;;  %s1505_s25 = sphi %s1560_s25, %s2129_s25   ;;  %s1501_s24 = sphi %s1558_s24, %s2128_s24  }
   0x4   : > { %s1583_s30 = sadd.s32 1, %s1513_s27   ;;  %s179_s8 = sadd.s32 1, %s1509_s26 }
   0x5   : > { %s176_s9 = ssub.s32 %s1513_s27, %s1583_s30  ;;  %p189_p0 = scmp.ne.s32.totalorder %s1509_s26, %s1505_s25 }
   0x6   : > { %p177_p1 = scmp.eq.s32.totalorder %s176_s9, 0  ;;  %p190_p2 = scmp.eq.s32.totalorder %s1579_s28, 1 }
   0x7   : > { %p195_p3 = scmp.ne.s32.totalorder %s1505_s25, %s1501_s24  ;;  %p196_p4 = scmp.eq.s32.totalorder %s1131_s29, 1 }
   0x8   : > { %s1594_s10 = scalar_select %p177_p1, %s1509_s26, %s179_s8  }
   0x9   : > { %p1596_p5 = por %p190_p2, %p189_p0  ;;  %p1600_p6 = por %p196_p4, %p195_p3 }
   0xa   : > { %p1134_p7 = scmp.ge.s32.totalorder %s1513_s27, 1  ;;  %p241_p8 = scmp.lt.s32.totalorder %s1513_s27, 3 }
   0xc   : > { %p242_p9 = pnand %p1134_p7, %p241_p8 }
   0xd   : > { %s1136_s17 = sshll.u32 (!%p242_p9), %s1579_s28, 4  ;;  %s270_s14 = sand.u32 (!%p242_p9), 1, %s1505_s25  }
   0xe   : > { %245 = sbr.rel (%p242_p9) target bundleno = 693 (0x2b5), region = 48  ;;  %p274_p10 = scmp.lt.s32.totalorder (!%p242_p9), %s1136_s17, 31 }
   0xf   : > { %s1135_s19 = sshll.u32 (!%p242_p9), %s270_s14, 7  ;;  %s1163_s21 = sshll.u32 (!%p242_p9), %s1579_s28, 11 }
  0x10   : > { %s2069_s8 = scalar_lea.hbm (!%p242_p9), %s2125_s7, %s1163_s21  ;;  %s2078_s28 = scalar_lea.sflag (!%p242_p9), [#allocation3], %s270_s14 }
  0x11   : > { %s1515_s13 = smov (!%p242_p9), [#allocation2]  }
  0x12   : > { %s1457_s15 = sshll.u32 (!%p242_p9), %s1515_s13, 4  ;;  %s1458_s15 = int_to_ptr.vmem [resolvable:$false] %s1457_s15 }
  0x13   : > { %v303_v0 = vld [vmem:[%s2119_s1 + $0x38] sm:$0xff]  ;;  %v302_v1 = vld [vmem:[%s2119_s1 + $0x30] sm:$0xff]  ;;  %v301_v2 = vld [vmem:[%s2119_s1 + $0x28] sm:$0xff]  ;;  %s2133_s17 = smov (!%p274_p10, %s1136_s17), 31  ;;  %vm311_vm0 = vcmask 523264   ;;  %s1459_s16 = scalar_lea.vmem %s1458_s15, 4096 }
  0x14   : > { %1220 = vmatprep.subr.mxu0 %v303_v0  ;;  %v600_v3 = vld [vmem:[%s2121_s3 + $0x78] sm:$0xff]  ;;  %v300_v4 = vld [vmem:[%s2119_s1 + $0x20] sm:$0xff]  ;;  %v599_v5 = vld [vmem:[%s2121_s3 + $0x70] sm:$0xff]  ;;  %s1137_s9 = sshll.u32 %s2133_s17, 3 }
  0x15   : > { %1221 = vmatpush3.msra.mxu0 %v303_v0  ;;  %1316 = vmatprep.subr.mxu1 %v600_v3  ;;  %v299_v6 = vld [vmem:[%s2119_s1 + $0x18] sm:$0xff]  ;;  %s1631_s18 = scalar_lea.vmem %s2118_s0, %s1137_s9  ;;  %v598_v7 = vld [vmem:[%s2121_s3 + $0x68] sm:$0xff]  ;;  %v298_v9 = vld [vmem:[%s2119_s1 + $0x10] sm:$0xff] }
  0x16   : > { %1222 = vmatprep.subr.mxu0 %v302_v1  ;;  %1332 = vmatpush3.msra.mxu1 %v600_v3  ;;  %v280_v8 = vld [vmem:[%s1631_s18] sm:$0xff]  ;;  %v297_v11 = vld [vmem:[%s2119_s1 + $0x8] sm:$0xff]  ;;  %v282_v14 = vld [vmem:[%s1631_s18 + $0x10] sm:$0xff] }
  0x17   : > { %1223 = vmatpush3.msra.mxu0 %v302_v1  ;;  %1317 = vmatprep.subr.mxu1 %v599_v5  ;;  %v597_v10 = vld [vmem:[%s2121_s3 + $0x60] sm:$0xff]  ;;  %v281_v13 = vld [vmem:[%s1631_s18 + $0x8] sm:$0xff]  ;;  %v283_v15 = vld [vmem:[%s1631_s18 + $0x18] sm:$0xff] }
  0x18   : > { %1224 = vmatprep.subr.mxu0 %v301_v2  ;;  %1333 = vmatpush3.msra.mxu1 %v599_v5  ;;  %v296_v12 = vld [vmem:[%s2119_s1] sm:$0xff]  ;;  %v285_v17 = vld [vmem:[%s1631_s18 + $0x28] sm:$0xff]  ;;  %v286_v18 = vld [vmem:[%s1631_s18 + $0x30] sm:$0xff] }
  0x19   : > { %1225 = vmatpush3.msra.mxu0 %v301_v2  ;;  %1318 = vmatprep.subr.mxu1 %v598_v7  ;;  %v284_v16 = vld [vmem:[%s1631_s18 + $0x20] sm:$0xff]  ;;  %v287_v19 = vld [vmem:[%s1631_s18 + $0x38] sm:$0xff]  ;;  %v289_v21 = vld [vmem:[%s1631_s18 + $0x48] sm:$0xff] }
  0x1a   : > { %1226 = vmatprep.subr.mxu0 %v300_v4  ;;  %1236 = vmatprep.mubr.msk.f32.mxu0 %vm311_vm0, %v280_v8  ;;  %v288_v20 = vld [vmem:[%s1631_s18 + $0x40] sm:$0xff]  ;;  %v290_v22 = vld [vmem:[%s1631_s18 + $0x50] sm:$0xff]  ;;  %v291_v23 = vld [vmem:[%s1631_s18 + $0x58] sm:$0xff] }
  0x1b   : > { %1227 = vmatpush3.msra.mxu0 %v300_v4  ;;  %1334 = vmatpush3.msra.mxu1 %v598_v7  ;;  %v292_v24 = vld [vmem:[%s1631_s18 + $0x60] sm:$0xff]  ;;  %v293_v25 = vld [vmem:[%s1631_s18 + $0x68] sm:$0xff]  ;;  %v294_v26 = vld [vmem:[%s1631_s18 + $0x70] sm:$0xff] }
  0x1c   : > { %1228 = vmatprep.subr.mxu0 %v299_v6  ;;  %1319 = vmatprep.subr.mxu1 %v597_v10  ;;  %v295_v27 = vld [vmem:[%s1631_s18 + $0x78] sm:$0xff]  ;;  %v595_v29 = vld [vmem:[%s2121_s3 + $0x50] sm:$0xff]  ;;  %v594_v30 = vld [vmem:[%s2121_s3 + $0x48] sm:$0xff]  ;;  %s1964_s18 = scalar_lea.vmem [#allocation2], %s1135_s19 }
  0x1d   : > { %1229 = vmatpush3.msra.mxu0 %v299_v6  ;;  %1335 = vmatpush3.msra.mxu1 %v597_v10  ;;  %v596_v28 = vld [vmem:[%s2121_s3 + $0x58] sm:$0xff]  ;;  %v593_v31 = vld [vmem:[%s2121_s3 + $0x40] sm:$0xff]  ;;  %v591_v33 = vld [vmem:[%s2121_s3 + $0x30] sm:$0xff]  ;;  %s1069_s22 = sshll.u32 %s1964_s18, 4  ;;  %s2071_s22 = int_to_ptr.vmem [resolvable:$true] %s1069_s22 }
  0x1e   : > { %1230 = vmatprep.subr.mxu0 %v298_v9  ;;  %1320 = vmatprep.subr.mxu1 %v596_v28  ;;  %v592_v32 = vld [vmem:[%s2121_s3 + $0x38] sm:$0xff]  ;;  %v590_v34 = vld [vmem:[%s2121_s3 + $0x28] sm:$0xff]  ;;  %v589_v35 = vld [vmem:[%s2121_s3 + $0x20] sm:$0xff]  ;;  %s1453_s9 = scalar_lea.vmem %s2071_s22, 2048  ;;  %p1460_p0 = scmp.lt.s32.totalorder %s2071_s22, %s1458_s15 }
  0x1f   : > { %1231 = vmatpush3.msra.mxu0 %v298_v9  ;;  %1336 = vmatpush3.msra.mxu1 %v596_v28  ;;  %v588_v36 = vld [vmem:[%s2121_s3 + $0x18] sm:$0xff]  ;;  %v587_v37 = vld [vmem:[%s2121_s3 + $0x10] sm:$0xff]  ;;  %v586_v38 = vld [vmem:[%s2121_s3 + $0x8] sm:$0xff]  ;;  %p1454_p11 = scmp.ne.s32.totalorder %s2071_s22, %s1453_s9  ;;  %p1461_p1 = scmp.lt.s32.totalorder %s1459_s16, %s1453_s9 }
  0x20   : > { %1232 = vmatprep.subr.mxu0 %v297_v11  ;;  %1321 = vmatprep.subr.mxu1 %v595_v29  ;;  %v585_v39 = vld [vmem:[%s2121_s3] sm:$0xff] }
  0x21   : > { %1233 = vmatpush3.msra.mxu0 %v297_v11  ;;  %1337 = vmatpush3.msra.mxu1 %v595_v29  ;;  %v1719_v40 = vld [vmem:[%s2120_s2] ss:$0 sm:$0xff]  ;;  %p1455_p12 = pnand %p1454_p11, %p1596_p5  ;;  %p1462_p2 = por %p1461_p1, %p1460_p0 }
  0x22   : > { %1234 = vmatprep.subr.mxu0 %v296_v12  ;;  %1322 = vmatprep.subr.mxu1 %v594_v30 }
  0x23   : > { %1235 = vmatpush3.msra.mxu0 %v296_v12  ;;  %1338 = vmatpush3.msra.mxu1 %v594_v30  ;;  %p1456_p13 = pneg %p1455_p12 }
  0x24   : > { %1237 = vmatmul.mubr.msk.f32.vlgmr.msra.gmra.mxu0 %vm311_vm0, %v281_v13  ;;  %1260 = vmatprep.subr.mxu0 %v600_v3 }
  0x25   : > { %1239 = vmatprep.mubr.msk.f32.mxu0 %vm311_vm0, %v282_v14  ;;  %1261 = vmatpush3.msra.mxu0 %v600_v3  ;;  %p1463_p3 = pnand %p1462_p2, %p1456_p13 }
  0x26   : > { %1262 = vmatprep.subr.mxu0 %v599_v5  ;;  %1323 = vmatprep.subr.mxu1 %v593_v31 }
  0x27   : > { %1263 = vmatpush3.msra.mxu0 %v599_v5  ;;  %1339 = vmatpush3.msra.mxu1 %v593_v31 }
  0x28   : > { %1240 = vmatmul.mubr.msk.f32.gmra.mxu0 %vm311_vm0, %v283_v15  ;;  %1264 = vmatprep.subr.mxu0 %v598_v7 }
  0x29   : > { %1242 = vmatprep.mubr.msk.f32.mxu0 %vm311_vm0, %v284_v16  ;;  %1265 = vmatpush3.msra.mxu0 %v598_v7 }
  0x2a   : > { %1266 = vmatprep.subr.mxu0 %v597_v10  ;;  %1324 = vmatprep.subr.mxu1 %v592_v32 }
  0x2b   : > { %1267 = vmatpush3.msra.mxu0 %v597_v10  ;;  %1340 = vmatpush3.msra.mxu1 %v592_v32 }
  0x2c   : > { %1243 = vmatmul.mubr.msk.f32.gmra.mxu0 %vm311_vm0, %v285_v17  ;;  %1268 = vmatprep.subr.mxu0 %v596_v28 }
  0x2d   : > { %1245 = vmatprep.mubr.msk.f32.mxu0 %vm311_vm0, %v286_v18  ;;  %1269 = vmatpush3.msra.mxu0 %v596_v28 }
  0x2e   : > { %1270 = vmatprep.subr.mxu0 %v595_v29  ;;  %1325 = vmatprep.subr.mxu1 %v591_v33 }
  0x2f   : > { %1271 = vmatpush3.msra.mxu0 %v595_v29  ;;  %1341 = vmatpush3.msra.mxu1 %v591_v33 }
  0x30   : > { %1246 = vmatmul.mubr.msk.f32.gmra.mxu0 %vm311_vm0, %v287_v19  ;;  %1272 = vmatprep.subr.mxu0 %v594_v30 }
  0x31   : > { %1248 = vmatprep.mubr.msk.f32.mxu0 %vm311_vm0, %v288_v20  ;;  %1273 = vmatpush3.msra.mxu0 %v594_v30 }
  0x32   : > { %1274 = vmatprep.subr.mxu0 %v593_v31  ;;  %1326 = vmatprep.subr.mxu1 %v590_v34 }
  0x33   : > { %1275 = vmatpush3.msra.mxu0 %v593_v31  ;;  %1342 = vmatpush3.msra.mxu1 %v590_v34 }
  0x34   : > { %1249 = vmatmul.mubr.msk.f32.gmra.mxu0 %vm311_vm0, %v289_v21  ;;  %1276 = vmatprep.subr.mxu0 %v592_v32 }
  0x35   : > { %1251 = vmatprep.mubr.msk.f32.mxu0 %vm311_vm0, %v290_v22  ;;  %1277 = vmatpush3.msra.mxu0 %v592_v32 }
  0x36   : > { %1278 = vmatprep.subr.mxu0 %v591_v33  ;;  %1327 = vmatprep.subr.mxu1 %v589_v35 }
  0x37   : > { %1279 = vmatpush3.msra.mxu0 %v591_v33  ;;  %1343 = vmatpush3.msra.mxu1 %v589_v35 }
  0x38   : > { %1252 = vmatmul.mubr.msk.f32.gmra.mxu0 %vm311_vm0, %v291_v23  ;;  %1280 = vmatprep.subr.mxu0 %v590_v34 }
  0x39   : > { %1254 = vmatprep.mubr.msk.f32.mxu0 %vm311_vm0, %v292_v24  ;;  %1281 = vmatpush3.msra.mxu0 %v590_v34 }
  0x3a   : > { %1282 = vmatprep.subr.mxu0 %v589_v35  ;;  %1328 = vmatprep.subr.mxu1 %v588_v36 }
  0x3b   : > { %1283 = vmatpush3.msra.mxu0 %v589_v35  ;;  %1344 = vmatpush3.msra.mxu1 %v588_v36 }
  0x3c   : > { %1255 = vmatmul.mubr.msk.f32.gmra.mxu0 %vm311_vm0, %v293_v25  ;;  %1284 = vmatprep.subr.mxu0 %v588_v36 }
  0x3d   : > { %1257 = vmatprep.mubr.msk.f32.mxu0 %vm311_vm0, %v294_v26  ;;  %1285 = vmatpush3.msra.mxu0 %v588_v36 }
  0x3e   : > { %1286 = vmatprep.subr.mxu0 %v587_v37  ;;  %1329 = vmatprep.subr.mxu1 %v587_v37 }
  0x3f   : > { %1287 = vmatpush3.msra.mxu0 %v587_v37  ;;  %1345 = vmatpush3.msra.mxu1 %v587_v37 }
  0x40   : > { %1258 = vmatmul.mubr.msk.f32.gmra.mxu0 %vm311_vm0, %v295_v27  ;;  %1288 = vmatprep.subr.mxu0 %v586_v38 }
  0x41   : > { %1330 = vmatprep.subr.mxu1 %v586_v38  ;;  %1289 = vmatpush3.msra.mxu0 %v586_v38 }
  0x42   : > { %1346 = vmatpush3.msra.mxu1 %v586_v38  ;;  %1290 = vmatprep.subr.mxu0 %v585_v39 }
  0x43   : > { %1331 = vmatprep.subr.mxu1 %v585_v39  ;;  %1291 = vmatpush3.msra.mxu0 %v585_v39 }
  0x44   : > { %1347 = vmatpush3.msra.mxu1 %v585_v39 }
  0xe4   : > { %v1238_v41 = vpop.f32.mrf.mxu0 }
  0xe5   : > { %v1722_v42 = vadd.f32 %v1238_v41, %v1719_v40 }
  0xe6   : > { %v426_v43 = vpop.f32.mrf.mxu0 }
  0xe7   : > { %v522_v44 = vmul.f32 0.70710677, %v1722_v42  ;;  %v1726_v45 = vadd.f32 %v1719_v40, %v426_v43  ;;  %v506_v14 = vmul.f32 0.5, %v1722_v42 }
  0xe8   : > { %v1241_v46 = vpop.f32.mrf.mxu0 }
  0xe9   : > { %1389 = verf.f32 %v522_v44  ;;  %v521_v47 = vmul.f32 0.70710677, %v1726_v45  ;;  %v1730_v48 = vadd.f32 %v1241_v46, %v1719_v40  ;;  %v505_v10 = vmul.f32 0.5, %v1726_v45 }
  0xea   : > { %v436_v49 = vpop.f32.mrf.mxu0 }
  0xeb   : > { %1391 = verf.f32 %v521_v47  ;;  %v524_v50 = vmul.f32 0.70710677, %v1730_v48  ;;  %v1734_v51 = vadd.f32 %v1719_v40, %v436_v49  ;;  %v508_v30 = vmul.f32 0.5, %v1730_v48 }
  0xec   : > { %v1244_v52 = vpop.f32.mrf.mxu0 }
  0xed   : > { %1393 = verf.f32 %v524_v50  ;;  %v523_v53 = vmul.f32 0.70710677, %v1734_v51  ;;  %v1738_v54 = vadd.f32 %v1244_v52, %v1719_v40  ;;  %v507_v27 = vmul.f32 0.5, %v1734_v51 }
  0xee   : > { %v446_v55 = vpop.f32.mrf.mxu0 }
  0xef   : > { %1395 = verf.f32 %v523_v53  ;;  %v526_v56 = vmul.f32 0.70710677, %v1738_v54  ;;  %v1742_v57 = vadd.f32 %v1719_v40, %v446_v55  ;;  %v510_v43 = vmul.f32 0.5, %v1738_v54 }
  0xf0   : > { %v1247_v58 = vpop.f32.mrf.mxu0 }
  0xf1   : > { %1397 = verf.f32 %v526_v56  ;;  %v525_v59 = vmul.f32 0.70710677, %v1742_v57  ;;  %v1746_v60 = vadd.f32 %v1247_v58, %v1719_v40  ;;  %v509_v46 = vmul.f32 0.5, %v1742_v57 }
  0xf2   : > { %v456_v61 = vpop.f32.mrf.mxu0 }
  0xf3   : > { %v528_v62 = vmul.f32 0.70710677, %v1746_v60  ;;  %v1750_v63 = vadd.f32 %v1719_v40, %v456_v61  ;;  %1399 = verf.f32 %v525_v59 }
  0xf4   : > { %v1250_v0 = vpop.f32.mrf.mxu0 }
  0xf5   : > { %1401 = verf.f32 %v528_v62  ;;  %v527_v1 = vmul.f32 0.70710677, %v1750_v63  ;;  %v1754_v2 = vadd.f32 %v1250_v0, %v1719_v40  ;;  %v511_v53 = vmul.f32 0.5, %v1750_v63 }
  0xf6   : > { %v1390_v3 = vpop.eup %1389  ;;  %v466_v4 = vpop.f32.mrf.mxu0  ;;  %v512_v0 = vmul.f32 0.5, %v1746_v60 }
  0xf7   : > { %1403 = verf.f32 %v527_v1  ;;  %v530_v5 = vmul.f32 0.70710677, %v1754_v2  ;;  %v554_v7 = vadd.f32 1.0, %v1390_v3  ;;  %v1758_v8 = vadd.f32 %v1719_v40, %v466_v4 }
  0xf8   : > { %v1392_v6 = vpop.eup %1391  ;;  %v1253_v9 = vpop.f32.mrf.mxu0  ;;  %v514_v3 = vmul.f32 0.5, %v1754_v2 }
  0xf9   : > { %1405 = verf.f32 %v530_v5  ;;  %v1762_v11 = vadd.f32 %v1253_v9, %v1719_v40  ;;  %v553_v12 = vadd.f32 1.0, %v1392_v6  ;;  %v529_v15 = vmul.f32 0.70710677, %v1758_v8 }
  0xfa   : > { %v1394_v13 = vpop.eup %1393  ;;  %v476_v16 = vpop.f32.mrf.mxu0  ;;  %v570_v21 = vmul.f32 %v554_v7, %v506_v14  ;;  %v513_v7 = vmul.f32 0.5, %v1758_v8 }
  0xfb   : > { %v532_v17 = vmul.f32 0.70710677, %v1762_v11  ;;  %v1768_v18 = vadd.f32 %v1719_v40, %v476_v16  ;;  %v569_v19 = vmul.f32 %v553_v12, %v505_v10  ;;  %1407 = verf.f32 %v529_v15 }
  0xfc   : > { %v1396_v20 = vpop.eup %1395  ;;  %v1256_v22 = vpop.f32.mrf.mxu0  ;;  %v556_v25 = vadd.f32 1.0, %v1394_v13  ;;  %v516_v10 = vmul.f32 0.5, %v1762_v11 }
  0xfd   : > { %1409 = verf.f32 %v532_v17  ;;  %v531_v23 = vmul.f32 0.70710677, %v1768_v18  ;;  %v1772_v24 = vadd.f32 %v1256_v22, %v1719_v40  ;;  %1292 = vmatprep.mubr.f32.mxu0 %v569_v19  ;;  %v555_v29 = vadd.f32 1.0, %v1396_v20 }
  0xfe   : > { %v1398_v26 = vpop.eup %1397  ;;  %v486_v28 = vpop.f32.mrf.mxu0  ;;  %1293 = vmatmul.mubr.f32.vlgmr.msra.gmra.mxu0 %v570_v21  ;;  %v572_v39 = vmul.f32 %v556_v25, %v508_v30  ;;  %v515_v12 = vmul.f32 0.5, %v1768_v18 }
  0xff   : > { %1411 = verf.f32 %v531_v23  ;;  %v534_v31 = vmul.f32 0.70710677, %v1772_v24  ;;  %v1778_v32 = vadd.f32 %v1719_v40, %v486_v28  ;;  %v571_v35 = vmul.f32 %v555_v29, %v507_v27 }
 0x100   : > { %v1400_v33 = vpop.eup %1399  ;;  %v1259_v34 = vpop.f32.mrf.mxu0  ;;  %v558_v36 = vadd.f32 1.0, %v1398_v26  ;;  %v518_v20 = vmul.f32 0.5, %v1772_v24 }
 0x101   : > { %1413 = verf.f32 %v534_v31  ;;  %v533_v37 = vmul.f32 0.70710677, %v1778_v32  ;;  %v1782_v38 = vadd.f32 %v1259_v34, %v1719_v40  ;;  %1295 = vmatprep.mubr.f32.mxu0 %v571_v35  ;;  %v557_v47 = vadd.f32 1.0, %v1400_v33 }
 0x102   : > { %v1402_v41 = vpop.eup %1401  ;;  %v496_v44 = vpop.f32.mrf.mxu0  ;;  %1296 = vmatmul.mubr.f32.gmra.mxu0 %v572_v39  ;;  %v574_v56 = vmul.f32 %v558_v36, %v510_v43  ;;  %v517_v21 = vmul.f32 0.5, %v1778_v32 }
 0x103   : > { %1415 = verf.f32 %v533_v37  ;;  %v536_v49 = vmul.f32 0.70710677, %v1782_v38  ;;  %v1788_v50 = vadd.f32 %v1719_v40, %v496_v44  ;;  %v573_v55 = vmul.f32 %v557_v47, %v509_v46 }
 0x104   : > { %v1404_v52 = vpop.eup %1403  ;;  %v560_v61 = vadd.f32 1.0, %v1402_v41  ;;  %v520_v29 = vmul.f32 0.5, %v1782_v38  ;;  %v1804_v41 = vld [vmem:[%s2122_s4] ss:$0 sm:$0xff] }
 0x105   : > { %1417 = verf.f32 %v536_v49  ;;  %v535_v58 = vmul.f32 0.70710677, %v1788_v50  ;;  %v559_v59 = vadd.f32 1.0, %v1404_v52  ;;  %1298 = vmatprep.mubr.f32.mxu1 %v573_v55  ;;  %v519_v30 = vmul.f32 0.5, %v1788_v50 }
 0x106   : > { %v1406_v62 = vpop.eup %1405  ;;  %1299 = vmatmul.mubr.f32.vlgmr.msra.gmra.mxu1 %v574_v56  ;;  %v576_v4 = vmul.f32 %v560_v61, %v512_v0 }
 0x107   : > { %1419 = verf.f32 %v535_v58  ;;  %v575_v1 = vmul.f32 %v559_v59, %v511_v53  ;;  %v562_v5 = vadd.f32 1.0, %v1406_v62 }
 0x108   : > { %v1408_v40 = vpop.eup %1407 }
 0x109   : > { %1301 = vmatprep.mubr.f32.mxu1 %v575_v1  ;;  %v561_v9 = vadd.f32 1.0, %v1408_v40  ;;  %v578_v16 = vmul.f32 %v562_v5, %v514_v3 }
 0x10a   : > { %v1410_v6 = vpop.eup %1409  ;;  %1302 = vmatmul.mubr.f32.gmra.mxu1 %v576_v4 }
 0x10b   : > { %v564_v13 = vadd.f32 1.0, %v1410_v6  ;;  %v577_v15 = vmul.f32 %v561_v9, %v513_v7 }
 0x10c   : > { %v1412_v14 = vpop.eup %1411 }
 0x10d   : > { %v563_v17 = vadd.f32 1.0, %v1412_v14  ;;  %1304 = vmatprep.mubr.f32.mxu1 %v577_v15  ;;  %v580_v23 = vmul.f32 %v564_v13, %v516_v10 }
 0x10e   : > { %v1414_v19 = vpop.eup %1413  ;;  %1305 = vmatmul.mubr.f32.gmra.mxu1 %v578_v16 }
 0x10f   : > { %v579_v22 = vmul.f32 %v563_v17, %v515_v12  ;;  %v566_v25 = vadd.f32 1.0, %v1414_v19 }
 0x110   : > { %v1416_v26 = vpop.eup %1415 }
 0x111   : > { %1307 = vmatprep.mubr.f32.mxu1 %v579_v22  ;;  %v565_v27 = vadd.f32 1.0, %v1416_v26  ;;  %v582_v33 = vmul.f32 %v566_v25, %v518_v20 }
 0x112   : > { %v1418_v28 = vpop.eup %1417  ;;  %1308 = vmatmul.mubr.f32.gmra.mxu1 %v580_v23 }
 0x113   : > { %v581_v31 = vmul.f32 %v565_v27, %v517_v21  ;;  %v568_v34 = vadd.f32 1.0, %v1418_v28 }
 0x114   : > { %v1420_v35 = vpop.eup %1419 }
 0x115   : > { %1310 = vmatprep.mubr.f32.mxu1 %v581_v31  ;;  %v567_v36 = vadd.f32 1.0, %v1420_v35  ;;  %v584_v39 = vmul.f32 %v568_v34, %v520_v29 }
 0x116   : > { %1311 = vmatmul.mubr.f32.gmra.mxu1 %v582_v33 }
 0x117   : > { %v583_v37 = vmul.f32 %v567_v36, %v519_v30 }
 0x119   : > { %1313 = vmatprep.mubr.f32.mxu1 %v583_v37 }
 0x11a   : > { %1314 = vmatmul.mubr.f32.gmra.mxu1 %v584_v39 }
 0x1be   : > { %v1294_v43 = vpop.f32.mrf.mxu0 }
 0x1bf   : > { %v680_v44 = vadd.f32 %v1294_v43, %v1804_v41 }
 0x1c0   : > { %v674_v46 = vpop.f32.mrf.mxu0 }
 0x1c1   : > { %v1808_v47 = vadd.f32 %v680_v44, %v1722_v42  ;;  %v675_v49 = vadd.f32 %v1804_v41, %v674_v46 }
 0x1c2   : > { %v1297_v52 = vpop.f32.mrf.mxu0 }
 0x1c3   : > { %771 = vadd.xlane.f32.xlu0 %v1808_v47  ;;  %v802_v53 = vmul.f32 %v1808_v47, %v1808_v47  ;;  %v690_v55 = vadd.f32 %v1297_v52, %v1804_v41  ;;  %v1816_v56 = vadd.f32 %v675_v49, %v1726_v45 }
 0x1c4   : > { %v684_v58 = vpop.f32.mrf.mxu0 }
 0x1c5   : > { %819 = vadd.xlane.f32.xlu1 %v802_v53  ;;  %v685_v59 = vadd.f32 %v1804_v41, %v684_v58  ;;  %v1820_v42 = vadd.f32 %v690_v55, %v1730_v48  ;;  %v801_v0 = vmul.f32 %v1816_v56, %v1816_v56 }
 0x1c6   : > { %v1300_v61 = vpop.f32.mrf.mxu1 }
 0x1c7   : > { %769 = vadd.xlane.f32.xlu0 %v1816_v56  ;;  %v1824_v62 = vadd.f32 %v685_v59, %v1734_v51  ;;  %v700_v3 = vadd.f32 %v1300_v61, %v1804_v41  ;;  %v804_v51 = vmul.f32 %v1820_v42, %v1820_v42 }
 0x1c8   : > { %v694_v45 = vpop.f32.mrf.mxu1 }
 0x1c9   : > { %775 = vadd.xlane.f32.xlu1 %v1820_v42  ;;  %v695_v1 = vadd.f32 %v1804_v41, %v694_v45  ;;  %v803_v48 = vmul.f32 %v1824_v62, %v1824_v62  ;;  %v1840_v6 = vadd.f32 %v700_v3, %v1738_v54 }
 0x1ca   : > { %v1303_v40 = vpop.f32.mrf.mxu1 }
 0x1cb   : > { %817 = vadd.xlane.f32.xlu0 %v801_v0  ;;  %v1837_v4 = vadd.f32 %v695_v1, %v1742_v57  ;;  %v710_v12 = vadd.f32 %v1303_v40, %v1804_v41  ;;  %v806_v57 = vmul.f32 %v1840_v6, %v1840_v6 }
 0x1cc   : > { %v704_v5 = vpop.f32.mrf.mxu1 }
 0x1cd   : > { %773 = vadd.xlane.f32.xlu1 %v1824_v62  ;;  %v705_v7 = vadd.f32 %v1804_v41, %v704_v5  ;;  %v805_v9 = vmul.f32 %v1837_v4, %v1837_v4  ;;  %v1854_v14 = vadd.f32 %v710_v12, %v1746_v60 }
 0x1ce   : > { %v1306_v10 = vpop.f32.mrf.mxu1 }
 0x1cf   : > { %821 = vadd.xlane.f32.xlu0 %v803_v48  ;;  %v1851_v13 = vadd.f32 %v705_v7, %v1750_v63  ;;  %v720_v19 = vadd.f32 %v1306_v10, %v1804_v41  ;;  %v808_v63 = vmul.f32 %v1854_v14, %v1854_v14 }
 0x1d0   : > { %v714_v54 = vpop.f32.mrf.mxu1 }
 0x1d1   : > { %823 = vadd.xlane.f32.xlu1 %v804_v51  ;;  %v715_v15 = vadd.f32 %v1804_v41, %v714_v54  ;;  %v807_v16 = vmul.f32 %v1851_v13, %v1851_v13  ;;  %v1868_v21 = vadd.f32 %v720_v19, %v1754_v2 }
 0x1d2   : > { %v1309_v17 = vpop.f32.mrf.mxu1 }
 0x1d3   : > { %777 = vadd.xlane.f32.xlu0 %v1837_v4  ;;  %v1865_v20 = vadd.f32 %v715_v15, %v1758_v8  ;;  %v730_v26 = vadd.f32 %v1309_v17, %v1804_v41  ;;  %v810_v8 = vmul.f32 %v1868_v21, %v1868_v21 }
 0x1d4   : > { %v724_v60 = vpop.f32.mrf.mxu1 }
 0x1d5   : > { %779 = vadd.xlane.f32.xlu1 %v1840_v6  ;;  %v725_v22 = vadd.f32 %v1804_v41, %v724_v60  ;;  %v809_v23 = vmul.f32 %v1865_v20, %v1865_v20  ;;  %v1882_v28 = vadd.f32 %v730_v26, %v1762_v11 }
 0x1d6   : > { %v1312_v25 = vpop.f32.mrf.mxu1 }
 0x1d7   : > { %825 = vadd.xlane.f32.xlu0 %v805_v9  ;;  %v1879_v27 = vadd.f32 %v725_v22, %v1768_v18  ;;  %v740_v33 = vadd.f32 %v1312_v25, %v1804_v41  ;;  %v812_v18 = vmul.f32 %v1882_v28, %v1882_v28 }
 0x1d8   : > { %v734_v2 = vpop.f32.mrf.mxu1 }
 0x1d9   : > { %827 = vadd.xlane.f32.xlu1 %v806_v57  ;;  %v735_v29 = vadd.f32 %v1804_v41, %v734_v2  ;;  %v811_v30 = vmul.f32 %v1879_v27, %v1879_v27  ;;  %v1896_v35 = vadd.f32 %v740_v33, %v1772_v24 }
 0x1da   : > { %v1315_v31 = vpop.f32.mrf.mxu1 }
 0x1db   : > { %781 = vadd.xlane.f32.xlu0 %v1851_v13  ;;  %v1893_v34 = vadd.f32 %v735_v29, %v1778_v32  ;;  %v750_v39 = vadd.f32 %v1315_v31, %v1804_v41  ;;  %v814_v32 = vmul.f32 %v1896_v35, %v1896_v35 }
 0x1dc   : > { %v744_v11 = vpop.f32.mrf.mxu1 }
 0x1dd   : > { %783 = vadd.xlane.f32.xlu1 %v1854_v14  ;;  %v745_v36 = vadd.f32 %v1804_v41, %v744_v11  ;;  %v813_v37 = vmul.f32 %v1893_v34, %v1893_v34  ;;  %v1910_v24 = vadd.f32 %v750_v39, %v1782_v38 }
 0x1df   : > { %829 = vadd.xlane.f32.xlu0 %v807_v16  ;;  %v1907_v43 = vadd.f32 %v745_v36, %v1788_v50  ;;  %v816_v41 = vmul.f32 %v1910_v24, %v1910_v24 }
 0x1e1   : > { %831 = vadd.xlane.f32.xlu1 %v808_v63  ;;  %v815_v44 = vmul.f32 %v1907_v43, %v1907_v43 }
 0x1e3   : > { %785 = vadd.xlane.f32.xlu0 %v1865_v20 }
 0x1e5   : > { %787 = vadd.xlane.f32.xlu1 %v1868_v21 }
 0x1e7   : > { %833 = vadd.xlane.f32.xlu0 %v809_v23 }
 0x1e9   : > { %835 = vadd.xlane.f32.xlu1 %v810_v8 }
 0x1eb   : > { %789 = vadd.xlane.f32.xlu0 %v1879_v27 }
 0x1ed   : > { %791 = vadd.xlane.f32.xlu1 %v1882_v28 }
 0x1ef   : > { %837 = vadd.xlane.f32.xlu0 %v811_v30 }
 0x1f1   : > { %839 = vadd.xlane.f32.xlu1 %v812_v18 }
 0x1f3   : > { %793 = vadd.xlane.f32.xlu0 %v1893_v34 }
 0x1f5   : > { %795 = vadd.xlane.f32.xlu1 %v1896_v35 }
 0x1f7   : > { %841 = vadd.xlane.f32.xlu0 %v813_v37 }
 0x1f9   : > { %843 = vadd.xlane.f32.xlu1 %v814_v32  ;;  %v1943_v32 = vld [vmem:[%s2123_s5] ss:$0 sm:$0xff] }
 0x1fb   : > { %797 = vadd.xlane.f32.xlu0 %v1907_v43 }
 0x1fd   : > { %799 = vadd.xlane.f32.xlu1 %v1910_v24 }
 0x1ff   : > { %845 = vadd.xlane.f32.xlu0 %v815_v44 }
 0x201   : > { %847 = vadd.xlane.f32.xlu1 %v816_v41 }
 0x24c   : > { %v772_v46 = vpop.xlane.xlu0 %771 }
 0x24d   : > { %v850_v49 = vmul.f32 0.0078125, %v772_v46 }
 0x24e   : > { %v820_v50 = vpop.xlane.xlu1 %819 }
 0x24f   : > { %v882_v52 = vmul.f32 %v850_v49, %v850_v49  ;;  %v866_v53 = vmul.f32 0.0078125, %v820_v50  ;;  %v930_v33 = vsub.f32 %v1808_v47, %v850_v49  ;;  %v1952_v50 = vld [vmem:[%s2124_s6] ss:$0 sm:$0xff] }
 0x250   : > { %v770_v55 = vpop.xlane.xlu0 %769 }
 0x251   : > { %v898_v38 = vsub.f32 %v866_v53, %v882_v52  ;;  %v1918_v58 = vmul.f32 0.0078125, %v770_v55 }
 0x252   : > { %v776_v59 = vpop.xlane.xlu1 %775 }
 0x253   : > { %v914_v61 = vmax.f32 %v898_v38, 0.0  ;;  %v881_v1 = vmul.f32 %v1918_v58, %v1918_v58  ;;  %v1922_v3 = vmul.f32 0.0078125, %v776_v59  ;;  %v929_v59 = vsub.f32 %v1816_v56, %v1918_v58 }
 0x254   : > { %v818_v0 = vpop.xlane.xlu0 %817 }
 0x255   : > { %v946_v45 = vadd.f32 1e-05, %v914_v61  ;;  %v865_v48 = vmul.f32 0.0078125, %v818_v0  ;;  %v884_v54 = vmul.f32 %v1922_v3, %v1922_v3 }
 0x256   : > { %v774_v40 = vpop.xlane.xlu1 %773 }
 0x257   : > { %1421 = vrsqrt.f32 %v946_v45  ;;  %v897_v51 = vsub.f32 %v865_v48, %v881_v1  ;;  %v1924_v5 = vmul.f32 0.0078125, %v774_v40 }
 0x258   : > { %v822_v7 = vpop.xlane.xlu0 %821 }
 0x259   : > { %v913_v9 = vmax.f32 %v897_v51, 0.0  ;;  %v883_v10 = vmul.f32 %v1924_v5, %v1924_v5  ;;  %v867_v12 = vmul.f32 0.0078125, %v822_v7 }
 0x25a   : > { %v824_v57 = vpop.xlane.xlu1 %823 }
 0x25b   : > { %v945_v15 = vadd.f32 1e-05, %v913_v9  ;;  %v899_v16 = vsub.f32 %v867_v12, %v883_v10  ;;  %v868_v17 = vmul.f32 0.0078125, %v824_v57 }
 0x25c   : > { %v778_v19 = vpop.xlane.xlu0 %777 }
 0x25d   : > { %1423 = vrsqrt.f32 %v945_v15  ;;  %v915_v63 = vmax.f32 %v899_v16, 0.0  ;;  %v900_v60 = vsub.f32 %v868_v17, %v884_v54  ;;  %v1930_v22 = vmul.f32 0.0078125, %v778_v19 }
 0x25e   : > { %v780_v23 = vpop.xlane.xlu1 %779  ;;  %v931_v54 = vsub.f32 %v1824_v62, %v1924_v5  ;;  %v932_v19 = vsub.f32 %v1820_v42, %v1922_v3 }
 0x25f   : > { %v947_v25 = vadd.f32 1e-05, %v915_v63  ;;  %v916_v26 = vmax.f32 %v900_v60, 0.0  ;;  %v1932_v8 = vmul.f32 0.0078125, %v780_v23  ;;  %v885_v30 = vmul.f32 %v1930_v22, %v1930_v22 }
 0x260   : > { %v826_v2 = vpop.xlane.xlu0 %825 }
 0x261   : > { %1425 = vrsqrt.f32 %v947_v25  ;;  %v948_v29 = vadd.f32 1e-05, %v916_v26  ;;  %v869_v31 = vmul.f32 0.0078125, %v826_v2  ;;  %v886_v11 = vmul.f32 %v1932_v8, %v1932_v8 }
 0x262   : > { %v828_v18 = vpop.xlane.xlu1 %827 }
 0x263   : > { %1427 = vrsqrt.f32 %v948_v29  ;;  %v901_v36 = vsub.f32 %v869_v31, %v885_v30  ;;  %v870_v37 = vmul.f32 0.0078125, %v828_v18 }
 0x264   : > { %v1422_v39 = vpop.eup %1421  ;;  %v782_v44 = vpop.xlane.xlu0 %781 }
 0x265   : > { %v978_v41 = vmul.f32 %v1422_v39, %v930_v33  ;;  %v917_v46 = vmax.f32 %v901_v36, 0.0  ;;  %v902_v47 = vsub.f32 %v870_v37, %v886_v11  ;;  %v1947_v49 = vmul.f32 0.0078125, %v782_v44 }
 0x266   : > { %v784_v52 = vpop.xlane.xlu1 %783 }
 0x267   : > { %v1001_v53 = vmul.f32 %v1943_v32, %v978_v41  ;;  %v949_v55 = vadd.f32 1e-05, %v917_v46  ;;  %v918_v38 = vmax.f32 %v902_v47, 0.0  ;;  %v887_v61 = vmul.f32 %v1947_v49, %v1947_v49 }
 0x268   : > { %v1959_v0 = vmul.f32 0.0078125, %v784_v52  ;;  %v830_v45 = vpop.xlane.xlu0 %829  ;;  %v933_v47 = vsub.f32 %v1837_v4, %v1930_v22 }
 0x269   : > { %v1024_v1 = vadd.f32 %v1952_v50, %v1001_v53  ;;  %1429 = vrsqrt.f32 %v949_v55  ;;  %v950_v48 = vadd.f32 1e-05, %v918_v38  ;;  %v871_v40 = vmul.f32 0.0078125, %v830_v45 }
 0x26a   : > { %v1424_v51 = vpop.eup %1423  ;;  %v888_v7 = vmul.f32 %v1959_v0, %v1959_v0  ;;  %v832_v9 = vpop.xlane.xlu1 %831 }
 0x26b   : > { %1040 = vst [vmem:[%s1964_s18 + $0x8] sm:$0xff] %v1024_v1  ;;  %v977_v56 = vmul.f32 %v1424_v51, %v929_v59  ;;  %1431 = vrsqrt.f32 %v950_v48  ;;  %v903_v58 = vsub.f32 %v871_v40, %v887_v61  ;;  %v872_v10 = vmul.f32 0.0078125, %v832_v9 }
 0x26c   : > { %v786_v12 = vpop.xlane.xlu0 %785  ;;  %v934_v61 = vsub.f32 %v1840_v6, %v1932_v8 }
 0x26d   : > { %v1000_v57 = vmul.f32 %v1943_v32, %v977_v56  ;;  %v919_v15 = vmax.f32 %v903_v58, 0.0  ;;  %v904_v16 = vsub.f32 %v872_v10, %v888_v7  ;;  %v1972_v63 = vmul.f32 0.0078125, %v786_v12 }
 0x26e   : > { %v1426_v17 = vpop.eup %1425  ;;  %v788_v60 = vpop.xlane.xlu1 %787 }
 0x26f   : > { %v1023_v23 = vadd.f32 %v1952_v50, %v1000_v57  ;;  %v979_v25 = vmul.f32 %v1426_v17, %v931_v54  ;;  %v951_v26 = vadd.f32 1e-05, %v919_v15  ;;  %v920_v2 = vmax.f32 %v904_v16, 0.0 }
 0x270   : > { %v1428_v29 = vpop.eup %1427  ;;  %v1975_v30 = vmul.f32 0.0078125, %v788_v60  ;;  %v834_v31 = vpop.xlane.xlu0 %833  ;;  %v889_v42 = vmul.f32 %v1972_v63, %v1972_v63  ;;  %v935_v17 = vsub.f32 %v1851_v13, %v1947_v49 }
 0x271   : > { %1039 = vst [vmem:[%s1964_s18] sm:$0xff] %v1023_v23  ;;  %v1002_v62 = vmul.f32 %v1943_v32, %v979_v25  ;;  %v980_v5 = vmul.f32 %v1428_v29, %v932_v19  ;;  %1433 = vrsqrt.f32 %v951_v26  ;;  %v952_v33 = vadd.f32 1e-05, %v920_v2 }
 0x272   : > { %v890_v3 = vmul.f32 %v1975_v30, %v1975_v30  ;;  %v873_v18 = vmul.f32 0.0078125, %v834_v31  ;;  %v836_v11 = vpop.xlane.xlu1 %835  ;;  %v936_v2 = vsub.f32 %v1854_v14, %v1959_v0 }
 0x273   : > { %v1025_v36 = vadd.f32 %v1952_v50, %v1002_v62  ;;  %v1003_v37 = vmul.f32 %v1943_v32, %v980_v5  ;;  %1435 = vrsqrt.f32 %v952_v33  ;;  %v874_v39 = vmul.f32 0.0078125, %v836_v11 }
 0x274   : > { %v905_v44 = vsub.f32 %v873_v18, %v889_v42  ;;  %v790_v41 = vpop.xlane.xlu0 %789 }
 0x275   : > { %1041 = vst [vmem:[%s1964_s18 + $0x10] sm:$0xff] %v1025_v36  ;;  %v1026_v46 = vadd.f32 %v1952_v50, %v1003_v37  ;;  %v906_v52 = vsub.f32 %v874_v39, %v890_v3  ;;  %v1989_v53 = vmul.f32 0.0078125, %v790_v41 }
 0x276   : > { %v1430_v55 = vpop.eup %1429  ;;  %v921_v38 = vmax.f32 %v905_v44, 0.0  ;;  %v792_v59 = vpop.xlane.xlu1 %791 }
 0x277   : > { %1042 = vst [vmem:[%s1964_s18 + $0x18] sm:$0xff] %v1026_v46  ;;  %v981_v45 = vmul.f32 %v1430_v55, %v933_v47  ;;  %v922_v1 = vmax.f32 %v906_v52, 0.0  ;;  %v891_v51 = vmul.f32 %v1989_v53, %v1989_v53  ;;  %v1996_v7 = vmul.f32 0.0078125, %v792_v59 }
 0x278   : > { %v1432_v48 = vpop.eup %1431  ;;  %v953_v40 = vadd.f32 1e-05, %v921_v38  ;;  %v838_v4 = vpop.xlane.xlu0 %837  ;;  %v937_v38 = vsub.f32 %v1865_v20, %v1972_v63 }
 0x279   : > { %v1004_v22 = vmul.f32 %v1943_v32, %v981_v45  ;;  %v982_v9 = vmul.f32 %v1432_v48, %v934_v61  ;;  %v954_v56 = vadd.f32 1e-05, %v922_v1  ;;  %v875_v58 = vmul.f32 0.0078125, %v838_v4 }
 0x27a   : > { %1437 = vrsqrt.f32 %v953_v40  ;;  %v840_v10 = vpop.xlane.xlu1 %839  ;;  %v892_v57 = vmul.f32 %v1996_v7, %v1996_v7  ;;  %v938_v45 = vsub.f32 %v1868_v21, %v1975_v30 }
 0x27b   : > { %v1027_v6 = vadd.f32 %v1952_v50, %v1004_v22  ;;  %v1005_v8 = vmul.f32 %v1943_v32, %v982_v9  ;;  %1439 = vrsqrt.f32 %v954_v56  ;;  %v907_v12 = vsub.f32 %v875_v58, %v891_v51 }
 0x27c   : > { %v876_v54 = vmul.f32 0.0078125, %v840_v10  ;;  %v794_v15 = vpop.xlane.xlu0 %793 }
 0x27d   : > { %1043 = vst [vmem:[%s1964_s18 + $0x20] sm:$0xff] %v1027_v6  ;;  %v1028_v16 = vadd.f32 %v1952_v50, %v1005_v8  ;;  %v923_v19 = vmax.f32 %v907_v12, 0.0  ;;  %v2007_v60 = vmul.f32 0.0078125, %v794_v15 }
 0x27e   : > { %v1434_v23 = vpop.eup %1433  ;;  %v908_v25 = vsub.f32 %v876_v54, %v892_v57  ;;  %v796_v26 = vpop.xlane.xlu1 %795  ;;  %v939_v54 = vsub.f32 %v1879_v27, %v1989_v53 }
 0x27f   : > { %1044 = vst [vmem:[%s1964_s18 + $0x28] sm:$0xff] %v1028_v16  ;;  %v983_v29 = vmul.f32 %v1434_v23, %v935_v17  ;;  %v955_v31 = vadd.f32 1e-05, %v923_v19  ;;  %v893_v33 = vmul.f32 %v2007_v60, %v2007_v60  ;;  %v2014_v42 = vmul.f32 0.0078125, %v796_v26 }
 0x280   : > { %v1436_v62 = vpop.eup %1435  ;;  %v924_v5 = vmax.f32 %v908_v25, 0.0  ;;  %v842_v13 = vpop.xlane.xlu0 %841  ;;  %v940_v26 = vsub.f32 %v1882_v28, %v1996_v7 }
 0x281   : > { %v1006_v49 = vmul.f32 %v1943_v32, %v983_v29  ;;  %v984_v3 = vmul.f32 %v1436_v62, %v936_v2  ;;  %1441 = vrsqrt.f32 %v955_v31  ;;  %v877_v18 = vmul.f32 0.0078125, %v842_v13 }
 0x282   : > { %v956_v11 = vadd.f32 1e-05, %v924_v5  ;;  %v894_v14 = vmul.f32 %v2014_v42, %v2014_v42  ;;  %v844_v0 = vpop.xlane.xlu1 %843  ;;  %v941_v5 = vsub.f32 %v1893_v34, %v2007_v60  ;;  %v942_v7 = vsub.f32 %v1896_v35, %v2014_v42 }
 0x283   : > { %v1029_v36 = vadd.f32 %v1952_v50, %v1006_v49  ;;  %v1007_v37 = vmul.f32 %v1943_v32, %v984_v3  ;;  %v909_v39 = vsub.f32 %v877_v18, %v893_v33  ;;  %v878_v44 = vmul.f32 0.0078125, %v844_v0 }
 0x284   : > { %1443 = vrsqrt.f32 %v956_v11  ;;  %v798_v41 = vpop.xlane.xlu0 %797 }
 0x285   : > { %1045 = vst [vmem:[%s1964_s18 + $0x30] sm:$0xff] %v1029_v36  ;;  %v1030_v46 = vadd.f32 %v1952_v50, %v1007_v37  ;;  %v925_v47 = vmax.f32 %v909_v39, 0.0  ;;  %v910_v52 = vsub.f32 %v878_v44, %v894_v14  ;;  %v2023_v55 = vmul.f32 0.0078125, %v798_v41 }
 0x286   : > { %v800_v59 = vpop.xlane.xlu1 %799 }
 0x287   : > { %v1438_v61 = vpop.eup %1437  ;;  %1046 = vst [vmem:[%s1964_s18 + $0x38] sm:$0xff] %v1030_v46  ;;  %v957_v1 = vadd.f32 1e-05, %v925_v47  ;;  %v926_v48 = vmax.f32 %v910_v52, 0.0  ;;  %v895_v4 = vmul.f32 %v2023_v55, %v2023_v55  ;;  %v864_v22 = vmul.f32 0.0078125, %v800_v59 }
 0x288   : > { %v1440_v40 = vpop.eup %1439  ;;  %v985_v51 = vmul.f32 %v1438_v61, %v937_v38  ;;  %v846_v9 = vpop.xlane.xlu0 %845  ;;  %v943_v60 = vsub.f32 %v1907_v43, %v2023_v55 }
 0x289   : > { %v986_v56 = vmul.f32 %v1440_v40, %v938_v45  ;;  %1445 = vrsqrt.f32 %v957_v1  ;;  %v958_v58 = vadd.f32 1e-05, %v926_v48  ;;  %v879_v20 = vmul.f32 0.0078125, %v846_v9 }
 0x28a   : > { %v1008_v63 = vmul.f32 %v1943_v32, %v985_v51  ;;  %v896_v10 = vmul.f32 %v864_v22, %v864_v22  ;;  %v848_v6 = vpop.xlane.xlu1 %847  ;;  %v944_v42 = vsub.f32 %v1910_v24, %v864_v22 }
 0x28b   : > { %v1009_v21 = vmul.f32 %v1943_v32, %v986_v56  ;;  %1447 = vrsqrt.f32 %v958_v58  ;;  %v911_v30 = vsub.f32 %v879_v20, %v895_v4  ;;  %v880_v8 = vmul.f32 0.0078125, %v848_v6 }
 0x28c   : > { %v1031_v12 = vadd.f32 %v1952_v50, %v1008_v63 }
 0x28d   : > { %v1032_v57 = vadd.f32 %v1952_v50, %v1009_v21  ;;  %v927_v15 = vmax.f32 %v911_v30, 0.0  ;;  %v912_v16 = vsub.f32 %v880_v8, %v896_v10 }
 0x28e   : > { %v1442_v17 = vpop.eup %1441  ;;  %1047 = vst [vmem:[%s1964_s18 + $0x40] sm:$0xff] %v1031_v12 }
 0x28f   : > { %1048 = vst [vmem:[%s1964_s18 + $0x48] sm:$0xff] %v1032_v57  ;;  %v987_v19 = vmul.f32 %v1442_v17, %v939_v54  ;;  %v959_v23 = vadd.f32 1e-05, %v927_v15  ;;  %v928_v25 = vmax.f32 %v912_v16, 0.0 }
 0x291   : > { %v1444_v2 = vpop.eup %1443  ;;  %v1010_v29 = vmul.f32 %v1943_v32, %v987_v19  ;;  %1449 = vrsqrt.f32 %v959_v23  ;;  %v960_v31 = vadd.f32 1e-05, %v928_v25 }
 0x292   : > { %v988_v62 = vmul.f32 %v1444_v2, %v940_v26 }
 0x293   : > { %v1033_v27 = vadd.f32 %v1952_v50, %v1010_v29  ;;  %1451 = vrsqrt.f32 %v960_v31 }
 0x294   : > { %v1011_v53 = vmul.f32 %v1943_v32, %v988_v62 }
 0x295   : > { %1049 = vst [vmem:[%s1964_s18 + $0x50] sm:$0xff] %v1033_v27 }
 0x296   : > { %v1446_v33 = vpop.eup %1445  ;;  %v1034_v28 = vadd.f32 %v1952_v50, %v1011_v53 }
 0x297   : > { %v989_v13 = vmul.f32 %v1446_v33, %v941_v5 }
 0x298   : > { %v1448_v49 = vpop.eup %1447  ;;  %1050 = vst [vmem:[%s1964_s18 + $0x58] sm:$0xff] %v1034_v28 }
 0x299   : > { %v1012_v3 = vmul.f32 %v1943_v32, %v989_v13  ;;  %v990_v18 = vmul.f32 %v1448_v49, %v942_v7 }
 0x29b   : > { %v1035_v11 = vadd.f32 %v1952_v50, %v1012_v3  ;;  %v1013_v14 = vmul.f32 %v1943_v32, %v990_v18 }
 0x29d   : > { %1051 = vst [vmem:[%s1964_s18 + $0x60] sm:$0xff] %v1035_v11  ;;  %v1036_v34 = vadd.f32 %v1952_v50, %v1013_v14 }
 0x29e   : > { %v1450_v35 = vpop.eup %1449 }
 0x29f   : > { %1052 = vst [vmem:[%s1964_s18 + $0x68] sm:$0xff] %v1036_v34  ;;  %v991_v0 = vmul.f32 %v1450_v35, %v943_v60 }
 0x2a0   : > { %v1452_v36 = vpop.eup %1451 }
 0x2a1   : > { %v1014_v37 = vmul.f32 %v1943_v32, %v991_v0  ;;  %v992_v39 = vmul.f32 %v1452_v36, %v944_v42 }
 0x2a3   : > { %v1037_v44 = vadd.f32 %v1952_v50, %v1014_v37  ;;  %v1015_v41 = vmul.f32 %v1943_v32, %v992_v39 }
 0x2a5   : > { %1053 = vst [vmem:[%s1964_s18 + $0x70] sm:$0xff] %v1037_v44  ;;  %v1038_v43 = vadd.f32 %v1952_v50, %v1015_v41 }
 0x2a7   : > { %1054 = vst [vmem:[%s1964_s18 + $0x78] sm:$0xff] %v1038_v43 }
 0x2a8   : > { %1466 = shalt.err (!%p1463_p3)
}
 0x2a9   : > { %s1467_s14 = scalar_lea.hbm %s2069_s8, 2048  ;;  %s1471_s17 = scalar_lea.hbm %s2125_s7, 4096 }
 0x2aa   : > { %p1468_p4 = scmp.ne.s32.totalorder %s2069_s8, %s1467_s14  ;;  %p1472_p9 = scmp.lt.s32.totalorder %s2069_s8, %s2125_s7 }
 0x2ab   : > { %p1473_p10 = scmp.lt.s32.totalorder %s1471_s17, %s1467_s14 }
 0x2ac   : > { %p1469_p7 = pnand %p1468_p4, %p1596_p5 }
 0x2ad   : > { %p1474_p11 = por %p1473_p10, %p1472_p9 }
 0x2ae   : > { %p1470_p8 = pneg %p1469_p7 }
 0x2b0   : > { %p1475_p12 = pnand %p1474_p11, %p1470_p8 }
 0x2b2   : > { %1478 = shalt.err (!%p1475_p12)
}
 0x2b3   : > { %s1516_s23 = smov 128   ;;  %s1517_s29 = smov 8  }
 0x2b4   : > { %1348 = dma.vmem_to_hbm [thread:$0]  (%p1596_p5), %s2071_s22, 2048, %s2069_s8, %s2078_s28, %s1516_s23, %s1516_s23, %s1517_s29  }
 0x2b5 PF: > { %p1354_p13 = scmp.ge.s32.totalorder %s1513_s27, 2  ;;  %s1084_s9 = sand.u32 1, %s1501_s24  }
 0x2b6   : > { %s1085_s13 = scalar_lea.sflag [#allocation3], %s1084_s9 }
 0x2b7   : > { %p1351_p0 = pnand %p1354_p13, %p1600_p6 }
 0x2b9   : > { %p1352_p1 = pneg %p1351_p0 }
 0x2bb   : > { %1496 = dma.done.wait (%p1352_p1), %s1085_s13, 2048  }
 0x2bc   : > { %1498 = vsyncadd (%p1352_p1), %s1085_s13, 4294965248  ;;  %p17_p2 = scmp.ge.s32.totalorder %s1583_s30, 4   ;;  %s2128_s24 = smov %s1505_s25 }
 0x2bd   : > { %s2129_s25 = smov %s1509_s26  ;;  %s2130_s26 = smov %s1594_s10 }
 0x2be   : > { %s2131_s27 = smov %s1583_s30  ;;  %19 = sbr.rel (!%p17_p2) target bundleno = 3 (0x3), region = 83 }
 0x2c3   :  { %1090 = vsyncpa [#allocation3], 1 }
 0x2c4   :  { %1092 = vsyncpa [#allocation3 + $0x1], 1 }

</bundles_post_ra>
